<compile_context>
chip_gen: v6e
topology: v6e:2x2x1
jax: 0.10.0
libtpu: 0.0.40
codegen_flags: <defaults>
</compile_context>

<pallas_src>
import functools

import jax
import jax.numpy as jnp
import numpy as np
from jax.experimental import pallas as pl
from jax.experimental.pallas import tpu as pltpu


# ----------------------------------------------------------------------------
# Fused Pallas kernels (single block, transposed/lane-dense output)
# ----------------------------------------------------------------------------
def _apply_act(z, act):
    if act == "leaky":
        return jnp.where(z > 0, z, 0.2 * z)
    if act == "relu":
        return jnp.maximum(z, 0.0)
    if act == "tanh":
        return jnp.tanh(z)
    return z  # "none"


def _make_gemm_bn_act_kernel(act, groups, cout, m_cols):
    """y = W @ X (N,M); BN over (groups, M) per channel; affine; activation."""
    inv_count = 1.0 / float(groups * m_cols)
    eps = 1e-5

    def kernel(w_ref, x_ref, g_ref, b_ref, o_ref):
        y = jnp.dot(w_ref[...], x_ref[...],
                    preferred_element_type=jnp.float32)          # (N, M) f32
        s = jnp.sum(y, axis=1, keepdims=True)                     # (N, 1)
        if groups > 1:
            s = sum(s[i * cout:(i + 1) * cout] for i in range(groups))
            mean = jnp.concatenate([s * inv_count] * groups, axis=0)
        else:
            mean = s * inv_count
        d = y - mean
        v = jnp.sum(d * d, axis=1, keepdims=True)                 # (N, 1)
        if groups > 1:
            v = sum(v[i * cout:(i + 1) * cout] for i in range(groups))
            var = jnp.concatenate([v * inv_count] * groups, axis=0)
        else:
            var = v * inv_count
        scale = g_ref[...] * jax.lax.rsqrt(var + eps)             # (N, 1)
        z = d * scale + b_ref[...]                                # (y-mean)*scale + beta
        o_ref[...] = _apply_act(z, act).astype(o_ref.dtype)

    return kernel


def _make_gemm_bias_act_kernel(act):
    """y = W @ X + bias; activation."""
    def kernel(w_ref, x_ref, b_ref, o_ref):
        z = jnp.dot(w_ref[...], x_ref[...],
                    preferred_element_type=jnp.float32) + b_ref[...]
        o_ref[...] = _apply_act(z, act).astype(o_ref.dtype)

    return kernel


def fused_gemm_bn_act(Wm, Xt, gamma, beta, act, groups=1, out_dtype=jnp.bfloat16):
    """Y^T = act(BN(Wm @ Xt)).  Wm:(N,K) Xt:(K,M) gamma/beta:(N//groups,) -> (N,M)."""
    N, K = Wm.shape
    _, M = Xt.shape
    cout = N // groups
    g_full = jnp.tile(gamma.astype(jnp.float32), groups).reshape(N, 1)
    b_full = jnp.tile(beta.astype(jnp.float32), groups).reshape(N, 1)
    return pl.pallas_call(
        _make_gemm_bn_act_kernel(act, groups, cout, M),
        out_shape=jax.ShapeDtypeStruct((N, M), out_dtype),
        grid=(1,),
        in_specs=[
            pl.BlockSpec((N, K), lambda i: (0, 0)),
            pl.BlockSpec((K, M), lambda i: (0, 0)),
            pl.BlockSpec((N, 1), lambda i: (0, 0)),
            pl.BlockSpec((N, 1), lambda i: (0, 0)),
        ],
        out_specs=pl.BlockSpec((N, M), lambda i: (0, 0)),
        compiler_params=pltpu.CompilerParams(dimension_semantics=("arbitrary",)),
    )(Wm.astype(jnp.bfloat16), Xt.astype(jnp.bfloat16), g_full, b_full)


def fused_gemm_bias_act(Wm, Xt, bias, act, out_dtype=jnp.float32):
    """Y^T = act(Wm @ Xt + bias).  Wm:(N,K) Xt:(K,M) bias:(N,) -> (N,M)."""
    N, K = Wm.shape
    _, M = Xt.shape
    return pl.pallas_call(
        _make_gemm_bias_act_kernel(act),
        out_shape=jax.ShapeDtypeStruct((N, M), out_dtype),
        grid=(1,),
        in_specs=[
            pl.BlockSpec((N, K), lambda i: (0, 0)),
            pl.BlockSpec((K, M), lambda i: (0, 0)),
            pl.BlockSpec((N, 1), lambda i: (0, 0)),
        ],
        out_specs=pl.BlockSpec((N, M), lambda i: (0, 0)),
        compiler_params=pltpu.CompilerParams(dimension_semantics=("arbitrary",)),
    )(Wm.astype(jnp.bfloat16), Xt.astype(jnp.bfloat16),
      bias.reshape(N, 1).astype(jnp.float32))


# ----------------------------------------------------------------------------
# im2col in (C, B, H, W) layout — no transpose of the expanded patch tensor
# ----------------------------------------------------------------------------
def im2col_t(x, k, stride, padding):
    """x: (C, B, H, W) -> X^T: (C*k*k, B*Ho*Wo), feature order (c, kh, kw)."""
    C, B, H, W = x.shape
    xp = jnp.pad(x, ((0, 0), (0, 0), (padding, padding), (padding, padding)))
    Ho = (H + 2 * padding - k) // stride + 1
    Wo = (W + 2 * padding - k) // stride + 1
    cols = []
    for kh in range(k):
        for kw in range(k):
            cols.append(xp[:, :, kh: kh + stride * (Ho - 1) + 1: stride,
                               kw: kw + stride * (Wo - 1) + 1: stride])
    X = jnp.stack(cols, axis=1)                    # (C, k*k, B, Ho, Wo)
    return X.reshape(C * k * k, B * Ho * Wo), B, Ho, Wo


# ----------------------------------------------------------------------------
# Layer building blocks (activations kept in CNHW layout between layers)
# ----------------------------------------------------------------------------
def conv_bn_act(x, W, gamma, beta, stride, padding, act):
    Cout, Cin, k, _ = W.shape
    Xt, B, Ho, Wo = im2col_t(x.astype(jnp.bfloat16), k, stride, padding)
    Yt = fused_gemm_bn_act(W.reshape(Cout, Cin * k * k), Xt, gamma, beta, act)
    return Yt.reshape(Cout, B, Ho, Wo)


def conv_bias_act(x, W, bias, stride, padding, act, out_dtype=jnp.float32):
    Cout, Cin, k, _ = W.shape
    Xt, B, Ho, Wo = im2col_t(x.astype(jnp.bfloat16), k, stride, padding)
    Yt = fused_gemm_bias_act(W.reshape(Cout, Cin * k * k), Xt, bias, act, out_dtype)
    return Yt.reshape(Cout, B, Ho, Wo)


def mu_var_heads(h, Wmu, bmu, Wvar, bvar):
    """Both latent heads share one GEMM (same X, weights concatenated on N)."""
    Cout, Cin, k, _ = Wmu.shape
    Xt, B, Ho, Wo = im2col_t(h.astype(jnp.bfloat16), k, 1, 0)
    Wm = jnp.concatenate([Wmu.reshape(Cout, -1), Wvar.reshape(Cout, -1)], axis=0)
    bias = jnp.concatenate([bmu, bvar], axis=0)
    Yt = fused_gemm_bias_act(Wm, Xt, bias, "none", jnp.float32)      # (2*Cout, M)
    mu = Yt[:Cout].reshape(Cout, B, Ho, Wo)
    log_var = Yt[Cout:].reshape(Cout, B, Ho, Wo)
    return mu, log_var


def deconv_s1_bn_act(x, Wt, gamma, beta, padding, act):
    """ConvTranspose2d stride=1: flipped / transposed kernel + BN + act."""
    k = Wt.shape[2]
    W_eq = jnp.flip(Wt, axis=(2, 3)).transpose(1, 0, 2, 3)   # (Cout, Cin, k, k)
    return conv_bn_act(x, W_eq, gamma, beta, 1, k - 1 - padding, act)


def deconv_s1_bias_act(x, Wt, bias, padding, act, out_dtype=jnp.float32):
    k = Wt.shape[2]
    W_eq = jnp.flip(Wt, axis=(2, 3)).transpose(1, 0, 2, 3)
    return conv_bias_act(x, W_eq, bias, 1, k - 1 - padding, act, out_dtype)


# ConvTranspose2d(k=4, s=2, p=1) phase decomposition:
#   out[2t+ph, 2u+pw] = sum over a 2-tap window of the input per dim, where
#   (phase, patch-tap r over the pad-1 input) selects the transposed-conv
#   kernel index:  ph=0: r0->k3, r1->k1 ;  ph=1: r1->k2, r2->k0.
_S2_TAPMAP = {(0, 0): 3, (0, 1): 1, (1, 1): 2, (1, 2): 0}


def _deconv_s2_phase_weight(Wt):
    """ConvTranspose2d(k=4,s=2,p=1) weight (Cin,Cout,4,4) -> (4*Cout, Cin*9)."""
    Cin, Cout = Wt.shape[0], Wt.shape[1]
    Wm = Wt.transpose(1, 0, 2, 3)                     # (Cout, Cin, 4, 4)
    zero = jnp.zeros((Cout, Cin), Wt.dtype)
    phases = []
    for ph in range(2):
        for pw in range(2):
            taps = []
            for r in range(3):
                for s in range(3):
                    kh = _S2_TAPMAP.get((ph, r))
                    kw = _S2_TAPMAP.get((pw, s))
                    taps.append(Wm[:, :, kh, kw]
                                if (kh is not None and kw is not None) else zero)
            phases.append(jnp.stack(taps, axis=-1))   # (Cout, Cin, 9)
    return jnp.stack(phases, axis=0).reshape(4 * Cout, Cin * 9)


def deconv_s2_bn_act(x, Wt, gamma, beta, act):
    """ConvTranspose2d(4, stride=2, padding=1, bias=False) + BN + act (CNHW)."""
    Cout = Wt.shape[1]
    C, B, H, W = x.shape
    Xt, _, _, _ = im2col_t(x.astype(jnp.bfloat16), 3, 1, 1)          # (Cin*9, B*H*W)
    Wc = _deconv_s2_phase_weight(Wt)                                 # (4*Cout, Cin*9)
    # BN statistics are pooled over the 4 phases inside the kernel (groups=4).
    Yt = fused_gemm_bn_act(Wc, Xt, gamma, beta, act, groups=4)       # (4*Cout, B*H*W)
    y = Yt.reshape(2, 2, Cout, B, H, W)
    y = y.transpose(2, 3, 4, 0, 5, 1).reshape(Cout, B, 2 * H, 2 * W)  # pixel shuffle
    return y


# ----------------------------------------------------------------------------
# PriorVAE (32x32 branch) parameters + forward
# ----------------------------------------------------------------------------
def init_params(key, in_c=4, h_dim=8, Qbasec=8, Pbasec=8):
    def conv_w(key, shape):
        return 0.05 * jax.random.normal(key, shape, jnp.float32)

    def bn(key, c):
        k1, k2 = jax.random.split(key)
        return (1.0 + 0.1 * jax.random.normal(k1, (c,), jnp.float32),
                0.1 * jax.random.normal(k2, (c,), jnp.float32))

    keys = jax.random.split(key, 32)
    p = {}
    # qnet
    p["q1_w"] = conv_w(keys[0], (Qbasec, in_c, 3, 3));           p["q1_g"], p["q1_b"] = bn(keys[1], Qbasec)
    p["q2_w"] = conv_w(keys[2], (Qbasec * 2, Qbasec, 4, 4));     p["q2_g"], p["q2_b"] = bn(keys[3], Qbasec * 2)
    p["q3_w"] = conv_w(keys[4], (Qbasec * 4, Qbasec * 2, 4, 4)); p["q3_g"], p["q3_b"] = bn(keys[5], Qbasec * 4)
    p["q4_w"] = conv_w(keys[6], (Qbasec * 8, Qbasec * 4, 4, 4)); p["q4_g"], p["q4_b"] = bn(keys[7], Qbasec * 8)
    p["mu_w"] = conv_w(keys[8], (h_dim, Qbasec * 8, 4, 4));      p["mu_bias"] = 0.05 * jax.random.normal(keys[9], (h_dim,), jnp.float32)
    p["var_w"] = conv_w(keys[10], (h_dim, Qbasec * 8, 4, 4));    p["var_bias"] = 0.05 * jax.random.normal(keys[11], (h_dim,), jnp.float32)
    # pnet (ConvTranspose2d weights have shape (Cin, Cout, K, K))
    p["p1_w"] = conv_w(keys[12], (h_dim, Pbasec * 8, 4, 4));      p["p1_g"], p["p1_b"] = bn(keys[13], Pbasec * 8)
    p["p2_w"] = conv_w(keys[14], (Pbasec * 8, Pbasec * 8, 4, 4)); p["p2_g"], p["p2_b"] = bn(keys[15], Pbasec * 8)
    p["p3_w"] = conv_w(keys[16], (Pbasec * 8, Pbasec * 4, 4, 4)); p["p3_g"], p["p3_b"] = bn(keys[17], Pbasec * 4)
    p["p4_w"] = conv_w(keys[18], (Pbasec * 4, Pbasec * 2, 4, 4)); p["p4_g"], p["p4_b"] = bn(keys[19], Pbasec * 2)
    p["p5_w"] = conv_w(keys[20], (Pbasec * 2, in_c, 3, 3));       p["p5_bias"] = 0.05 * jax.random.normal(keys[21], (in_c,), jnp.float32)
    return p


@functools.partial(jax.jit, static_argnames=("mode",))
def prior_vae_forward(params, x, mode):
    if mode == "inference":
        v = jnp.transpose(x, (1, 0, 2, 3))                       # NCHW -> CNHW
        h = conv_bn_act(v, params["q1_w"], params["q1_g"], params["q1_b"], 1, 1, "leaky")
        h = conv_bn_act(h, params["q2_w"], params["q2_g"], params["q2_b"], 2, 1, "leaky")
        h = conv_bn_act(h, params["q3_w"], params["q3_g"], params["q3_b"], 2, 1, "leaky")
        h = conv_bn_act(h, params["q4_w"], params["q4_g"], params["q4_b"], 2, 1, "leaky")
        mu, log_var = mu_var_heads(h, params["mu_w"], params["mu_bias"],
                                   params["var_w"], params["var_bias"])
        return jnp.transpose(mu, (1, 0, 2, 3)), jnp.transpose(log_var, (1, 0, 2, 3))
    elif mode == "sample":
        h = jnp.transpose(x, (1, 0, 2, 3))                       # NCHW -> CNHW
        v = deconv_s1_bn_act(h, params["p1_w"], params["p1_g"], params["p1_b"], 0, "relu")
        v = deconv_s2_bn_act(v, params["p2_w"], params["p2_g"], params["p2_b"], "relu")
        v = deconv_s2_bn_act(v, params["p3_w"], params["p3_g"], params["p3_b"], "relu")
        v = deconv_s2_bn_act(v, params["p4_w"], params["p4_g"], params["p4_b"], "relu")
        v = deconv_s1_bias_act(v, params["p5_w"], params["p5_bias"], 1, "tanh")
        return jnp.transpose(v, (1, 0, 2, 3))
    raise NotImplementedError
# TODO(synk): log_q depends on an external gauss_log_likelihood (not defined in the module); not implemented.
# TODO(synk): only the 32x32 branch is implemented (the example input implies v_shape[2] == 32).


# ----------------------------------------------------------------------------
# Pure-JAX reference (bf16-matched numerics) for a self-check
# ----------------------------------------------------------------------------
def _q(x):
    return x.astype(jnp.bfloat16).astype(jnp.float32)


def _ref_conv(x, W, stride, padding):
    return jax.lax.conv_general_dilated(
        _q(x), _q(W), (stride, stride), [(padding, padding), (padding, padding)],
        dimension_numbers=("NCHW", "OIHW", "NCHW"))


def _ref_deconv(x, Wt, stride, padding):
    K = Wt.shape[2]
    W_eq = jnp.flip(Wt, axis=(2, 3)).transpose(1, 0, 2, 3)
    return jax.lax.conv_general_dilated(
        _q(x), _q(W_eq), (1, 1),
        [(K - 1 - padding, K - 1 - padding)] * 2,
        lhs_dilation=(stride, stride),
        dimension_numbers=("NCHW", "OIHW", "NCHW"))


def _ref_bn_act(y, gamma, beta, act):
    mean = jnp.mean(y, axis=(0, 2, 3), keepdims=True)
    var = jnp.mean((y - mean) ** 2, axis=(0, 2, 3), keepdims=True)
    z = (y - mean) * (gamma.reshape(1, -1, 1, 1) / jnp.sqrt(var + 1e-5)) \
        + beta.reshape(1, -1, 1, 1)
    if act == "leaky":
        return jnp.where(z > 0, z, 0.2 * z)
    if act == "relu":
        return jnp.maximum(z, 0.0)
    if act == "tanh":
        return jnp.tanh(z)
    return z


def _ref_inference(params, v):
    h = _ref_bn_act(_ref_conv(v, params["q1_w"], 1, 1), params["q1_g"], params["q1_b"], "leaky")
    h = _ref_bn_act(_ref_conv(h, params["q2_w"], 2, 1), params["q2_g"], params["q2_b"], "leaky")
    h = _ref_bn_act(_ref_conv(h, params["q3_w"], 2, 1), params["q3_g"], params["q3_b"], "leaky")
    h = _ref_bn_act(_ref_conv(h, params["q4_w"], 2, 1), params["q4_g"], params["q4_b"], "leaky")
    mu = _ref_conv(h, params["mu_w"], 1, 0) + params["mu_bias"].reshape(1, -1, 1, 1)
    log_var = _ref_conv(h, params["var_w"], 1, 0) + params["var_bias"].reshape(1, -1, 1, 1)
    return mu, log_var


def _ref_sample(params, h):
    v = _ref_bn_act(_ref_deconv(h, params["p1_w"], 1, 0), params["p1_g"], params["p1_b"], "relu")
    v = _ref_bn_act(_ref_deconv(v, params["p2_w"], 2, 1), params["p2_g"], params["p2_b"], "relu")
    v = _ref_bn_act(_ref_deconv(v, params["p3_w"], 2, 1), params["p3_g"], params["p3_b"], "relu")
    v = _ref_bn_act(_ref_deconv(v, params["p4_w"], 2, 1), params["p4_g"], params["p4_b"], "relu")
    v = jnp.tanh(_ref_deconv(v, params["p5_w"], 1, 1) + params["p5_bias"].reshape(1, -1, 1, 1))
    return v


if __name__ == "__main__":
    # v_shape = [2, 4, 32, 32], h_dim = 8, Qbasec = Pbasec = 8
    key = jax.random.PRNGKey(0)
    k_param, k_v, k_h = jax.random.split(key, 3)
    params = init_params(k_param, in_c=4, h_dim=8, Qbasec=8, Pbasec=8)

    v = jax.random.normal(k_v, (2, 4, 32, 32), jnp.float32)
    h = jax.random.normal(k_h, (2, 8, 1, 1), jnp.float32)

    mu, log_var = prior_vae_forward(params, v, mode="inference")
    recon = prior_vae_forward(params, h, mode="sample")
    jax.block_until_ready((mu, log_var, recon))

    assert mu.shape == (2, 8, 1, 1) and log_var.shape == (2, 8, 1, 1)
    assert recon.shape == (2, 4, 32, 32)

    # Correctness self-check against a pure-JAX reference with matched bf16
    # quantization points (loose tolerance covers accumulation-order effects).
    mu_r, lv_r = _ref_inference(params, v)
    rec_r = _ref_sample(params, h)
    np.testing.assert_allclose(np.asarray(mu), np.asarray(mu_r), atol=2e-2, rtol=2e-2)
    np.testing.assert_allclose(np.asarray(log_var), np.asarray(lv_r), atol=2e-2, rtol=2e-2)
    np.testing.assert_allclose(np.asarray(recon), np.asarray(rec_r), atol=2e-2, rtol=2e-2)

    print("KERNEL_OK")
</pallas_src>

<mosaic_0001>
module attributes {stable_mosaic.version = 11 : i64} {
  func.func @kernel(%arg0: i32, %arg1: memref<8x36xbf16, #tpu.memory_space<vmem>>, %arg2: memref<36x2048xbf16, #tpu.memory_space<vmem>>, %arg3: memref<8x1xf32, #tpu.memory_space<vmem>>, %arg4: memref<8x1xf32, #tpu.memory_space<vmem>>, %arg5: memref<8x2048xbf16, #tpu.memory_space<vmem>>) attributes {dimension_semantics = [#tpu.dimension_semantics<arbitrary>], iteration_bounds = array<i64: 1>, scalar_prefetch = 0 : i64, scratch_operands = 0 : i64, tpu.core_type = #tpu.core_type<tc>, window_params = [{pipeline_mode = #tpu.pipeline_mode<synchronous>, transform_indices = @transform_0, window_bounds = array<i64: 8, 36>}, {pipeline_mode = #tpu.pipeline_mode<synchronous>, transform_indices = @transform_1, window_bounds = array<i64: 36, 2048>}, {pipeline_mode = #tpu.pipeline_mode<synchronous>, transform_indices = @transform_2, window_bounds = array<i64: 8, 1>}, {pipeline_mode = #tpu.pipeline_mode<synchronous>, transform_indices = @transform_3, window_bounds = array<i64: 8, 1>}, {pipeline_mode = #tpu.pipeline_mode<synchronous>, transform_indices = @transform_4, window_bounds = array<i64: 8, 2048>}]} {
    %c0 = arith.constant 0 : index
    %c0_0 = arith.constant 0 : index
    %0 = vector.load %arg1[%c0, %c0_0] : memref<8x36xbf16, #tpu.memory_space<vmem>>, vector<8x36xbf16>
    %c0_1 = arith.constant 0 : index
    %c0_2 = arith.constant 0 : index
    %1 = vector.load %arg2[%c0_1, %c0_2] : memref<36x2048xbf16, #tpu.memory_space<vmem>>, vector<36x2048xbf16>
    %cst = arith.constant dense<0.000000e+00> : vector<8x2048xf32>
    %2 = tpu.matmul %0, %1, %cst {dimension_numbers = #tpu.dot_dimension_numbers<[1], [0], [0], [1], [0, 0, 1, 1], [], []>} : vector<8x36xbf16>, vector<36x2048xbf16>, vector<8x2048xf32> -> vector<8x2048xf32>
    %cst_3 = arith.constant dense<0.000000e+00> : vector<8xf32>
    %3 = vector.multi_reduction <add>, %2, %cst_3 [1] : vector<8x2048xf32> to vector<8xf32>
    %4 = vector.shape_cast %3 : vector<8xf32> to vector<8x1xf32>
    %cst_4 = arith.constant 4.8828125E-4 : f32
    %5 = vector.broadcast %cst_4 : f32 to vector<8x1xf32>
    %6 = arith.mulf %4, %5 : vector<8x1xf32>
    %7 = vector.broadcast %6 : vector<8x1xf32> to vector<8x2048xf32>
    %8 = arith.subf %2, %7 : vector<8x2048xf32>
    %9 = arith.mulf %8, %8 : vector<8x2048xf32>
    %cst_5 = arith.constant dense<0.000000e+00> : vector<8xf32>
    %10 = vector.multi_reduction <add>, %9, %cst_5 [1] : vector<8x2048xf32> to vector<8xf32>
    %11 = vector.shape_cast %10 : vector<8xf32> to vector<8x1xf32>
    %cst_6 = arith.constant 4.8828125E-4 : f32
    %12 = vector.broadcast %cst_6 : f32 to vector<8x1xf32>
    %13 = arith.mulf %11, %12 : vector<8x1xf32>
    %c0_7 = arith.constant 0 : index
    %c0_8 = arith.constant 0 : index
    %14 = vector.load %arg3[%c0_7, %c0_8] : memref<8x1xf32, #tpu.memory_space<vmem>>, vector<8x1xf32>
    %cst_9 = arith.constant 9.99999974E-6 : f32
    %15 = vector.broadcast %cst_9 : f32 to vector<8x1xf32>
    %16 = arith.addf %13, %15 : vector<8x1xf32>
    %17 = math.rsqrt %16 : vector<8x1xf32>
    %18 = arith.mulf %14, %17 : vector<8x1xf32>
    %19 = vector.broadcast %18 : vector<8x1xf32> to vector<8x2048xf32>
    %20 = arith.mulf %8, %19 : vector<8x2048xf32>
    %c0_10 = arith.constant 0 : index
    %c0_11 = arith.constant 0 : index
    %21 = vector.load %arg4[%c0_10, %c0_11] : memref<8x1xf32, #tpu.memory_space<vmem>>, vector<8x1xf32>
    %22 = vector.broadcast %21 : vector<8x1xf32> to vector<8x2048xf32>
    %23 = arith.addf %20, %22 : vector<8x2048xf32>
    %cst_12 = arith.constant 0.000000e+00 : f32
    %24 = vector.broadcast %cst_12 : f32 to vector<8x2048xf32>
    %25 = arith.cmpf ogt, %23, %24 : vector<8x2048xf32>
    %cst_13 = arith.constant 2.000000e-01 : f32
    %26 = vector.broadcast %cst_13 : f32 to vector<8x2048xf32>
    %27 = arith.mulf %26, %23 : vector<8x2048xf32>
    %28 = arith.select %25, %23, %27 : vector<8x2048xi1>, vector<8x2048xf32>
    %29 = arith.truncf %28 : vector<8x2048xf32> to vector<8x2048xbf16>
    %c0_14 = arith.constant 0 : index
    %c0_15 = arith.constant 0 : index
    %30 = vector.load %arg5[%c0_14, %c0_15] : memref<8x2048xbf16, #tpu.memory_space<vmem>>, vector<8x2048xbf16>
    tpu.vector_store %arg5[%c0_14, %c0_15], %29 {strides = array<i32>} : memref<8x2048xbf16, #tpu.memory_space<vmem>>, vector<8x2048xbf16>,
    return
  }
  func.func @transform_0(%arg0: i32) -> (i32, i32) {
    %c0_i32 = arith.constant 0 : i32
    %c0_i32_0 = arith.constant 0 : i32
    %c0_i32_1 = arith.constant 0 : i32
    return %c0_i32, %c0_i32_0 : i32, i32
  }
  func.func @transform_1(%arg0: i32) -> (i32, i32) {
    %c0_i32 = arith.constant 0 : i32
    %c0_i32_0 = arith.constant 0 : i32
    %c0_i32_1 = arith.constant 0 : i32
    return %c0_i32, %c0_i32_0 : i32, i32
  }
  func.func @transform_2(%arg0: i32) -> (i32, i32) {
    %c0_i32 = arith.constant 0 : i32
    %c0_i32_0 = arith.constant 0 : i32
    %c0_i32_1 = arith.constant 0 : i32
    return %c0_i32, %c0_i32_0 : i32, i32
  }
  func.func @transform_3(%arg0: i32) -> (i32, i32) {
    %c0_i32 = arith.constant 0 : i32
    %c0_i32_0 = arith.constant 0 : i32
    %c0_i32_1 = arith.constant 0 : i32
    return %c0_i32, %c0_i32_0 : i32, i32
  }
  func.func @transform_4(%arg0: i32) -> (i32, i32) {
    %c0_i32 = arith.constant 0 : i32
    %c0_i32_0 = arith.constant 0 : i32
    %c0_i32_1 = arith.constant 0 : i32
    return %c0_i32, %c0_i32_0 : i32, i32
  }
}

module attributes {stable_mosaic.version = 11 : i64} {
  func.func @kernel(%arg0: i32, %arg1: memref<16x128xbf16, #tpu.memory_space<vmem>>, %arg2: memref<128x512xbf16, #tpu.memory_space<vmem>>, %arg3: memref<16x1xf32, #tpu.memory_space<vmem>>, %arg4: memref<16x1xf32, #tpu.memory_space<vmem>>, %arg5: memref<16x512xbf16, #tpu.memory_space<vmem>>) attributes {dimension_semantics = [#tpu.dimension_semantics<arbitrary>], iteration_bounds = array<i64: 1>, scalar_prefetch = 0 : i64, scratch_operands = 0 : i64, tpu.core_type = #tpu.core_type<tc>, window_params = [{pipeline_mode = #tpu.pipeline_mode<synchronous>, transform_indices = @transform_0, window_bounds = array<i64: 16, 128>}, {pipeline_mode = #tpu.pipeline_mode<synchronous>, transform_indices = @transform_1, window_bounds = array<i64: 128, 512>}, {pipeline_mode = #tpu.pipeline_mode<synchronous>, transform_indices = @transform_2, window_bounds = array<i64: 16, 1>}, {pipeline_mode = #tpu.pipeline_mode<synchronous>, transform_indices = @transform_3, window_bounds = array<i64: 16, 1>}, {pipeline_mode = #tpu.pipeline_mode<synchronous>, transform_indices = @transform_4, window_bounds = array<i64: 16, 512>}]} {
    %c0 = arith.constant 0 : index
    %c0_0 = arith.constant 0 : index
    %0 = vector.load %arg1[%c0, %c0_0] : memref<16x128xbf16, #tpu.memory_space<vmem>>, vector<16x128xbf16>
    %c0_1 = arith.constant 0 : index
    %c0_2 = arith.constant 0 : index
    %1 = vector.load %arg2[%c0_1, %c0_2] : memref<128x512xbf16, #tpu.memory_space<vmem>>, vector<128x512xbf16>
    %cst = arith.constant dense<0.000000e+00> : vector<16x512xf32>
    %2 = tpu.matmul %0, %1, %cst {dimension_numbers = #tpu.dot_dimension_numbers<[1], [0], [0], [1], [0, 0, 1, 1], [], []>} : vector<16x128xbf16>, vector<128x512xbf16>, vector<16x512xf32> -> vector<16x512xf32>
    %cst_3 = arith.constant dense<0.000000e+00> : vector<16xf32>
    %3 = vector.multi_reduction <add>, %2, %cst_3 [1] : vector<16x512xf32> to vector<16xf32>
    %4 = vector.shape_cast %3 : vector<16xf32> to vector<16x1xf32>
    %cst_4 = arith.constant 0.001953125 : f32
    %5 = vector.broadcast %cst_4 : f32 to vector<16x1xf32>
    %6 = arith.mulf %4, %5 : vector<16x1xf32>
    %7 = vector.broadcast %6 : vector<16x1xf32> to vector<16x512xf32>
    %8 = arith.subf %2, %7 : vector<16x512xf32>
    %9 = arith.mulf %8, %8 : vector<16x512xf32>
    %cst_5 = arith.constant dense<0.000000e+00> : vector<16xf32>
    %10 = vector.multi_reduction <add>, %9, %cst_5 [1] : vector<16x512xf32> to vector<16xf32>
    %11 = vector.shape_cast %10 : vector<16xf32> to vector<16x1xf32>
    %cst_6 = arith.constant 0.001953125 : f32
    %12 = vector.broadcast %cst_6 : f32 to vector<16x1xf32>
    %13 = arith.mulf %11, %12 : vector<16x1xf32>
    %c0_7 = arith.constant 0 : index
    %c0_8 = arith.constant 0 : index
    %14 = vector.load %arg3[%c0_7, %c0_8] : memref<16x1xf32, #tpu.memory_space<vmem>>, vector<16x1xf32>
    %cst_9 = arith.constant 9.99999974E-6 : f32
    %15 = vector.broadcast %cst_9 : f32 to vector<16x1xf32>
    %16 = arith.addf %13, %15 : vector<16x1xf32>
    %17 = math.rsqrt %16 : vector<16x1xf32>
    %18 = arith.mulf %14, %17 : vector<16x1xf32>
    %19 = vector.broadcast %18 : vector<16x1xf32> to vector<16x512xf32>
    %20 = arith.mulf %8, %19 : vector<16x512xf32>
    %c0_10 = arith.constant 0 : index
    %c0_11 = arith.constant 0 : index
    %21 = vector.load %arg4[%c0_10, %c0_11] : memref<16x1xf32, #tpu.memory_space<vmem>>, vector<16x1xf32>
    %22 = vector.broadcast %21 : vector<16x1xf32> to vector<16x512xf32>
    %23 = arith.addf %20, %22 : vector<16x512xf32>
    %cst_12 = arith.constant 0.000000e+00 : f32
    %24 = vector.broadcast %cst_12 : f32 to vector<16x512xf32>
    %25 = arith.cmpf ogt, %23, %24 : vector<16x512xf32>
    %cst_13 = arith.constant 2.000000e-01 : f32
    %26 = vector.broadcast %cst_13 : f32 to vector<16x512xf32>
    %27 = arith.mulf %26, %23 : vector<16x512xf32>
    %28 = arith.select %25, %23, %27 : vector<16x512xi1>, vector<16x512xf32>
    %29 = arith.truncf %28 : vector<16x512xf32> to vector<16x512xbf16>
    %c0_14 = arith.constant 0 : index
    %c0_15 = arith.constant 0 : index
    %30 = vector.load %arg5[%c0_14, %c0_15] : memref<16x512xbf16, #tpu.memory_space<vmem>>, vector<16x512xbf16>
    tpu.vector_store %arg5[%c0_14, %c0_15], %29 {strides = array<i32>} : memref<16x512xbf16, #tpu.memory_space<vmem>>, vector<16x512xbf16>,
    return
  }
  func.func @transform_0(%arg0: i32) -> (i32, i32) {
    %c0_i32 = arith.constant 0 : i32
    %c0_i32_0 = arith.constant 0 : i32
    %c0_i32_1 = arith.constant 0 : i32
    return %c0_i32, %c0_i32_0 : i32, i32
  }
  func.func @transform_1(%arg0: i32) -> (i32, i32) {
    %c0_i32 = arith.constant 0 : i32
    %c0_i32_0 = arith.constant 0 : i32
    %c0_i32_1 = arith.constant 0 : i32
    return %c0_i32, %c0_i32_0 : i32, i32
  }
  func.func @transform_2(%arg0: i32) -> (i32, i32) {
    %c0_i32 = arith.constant 0 : i32
    %c0_i32_0 = arith.constant 0 : i32
    %c0_i32_1 = arith.constant 0 : i32
    return %c0_i32, %c0_i32_0 : i32, i32
  }
  func.func @transform_3(%arg0: i32) -> (i32, i32) {
    %c0_i32 = arith.constant 0 : i32
    %c0_i32_0 = arith.constant 0 : i32
    %c0_i32_1 = arith.constant 0 : i32
    return %c0_i32, %c0_i32_0 : i32, i32
  }
  func.func @transform_4(%arg0: i32) -> (i32, i32) {
    %c0_i32 = arith.constant 0 : i32
    %c0_i32_0 = arith.constant 0 : i32
    %c0_i32_1 = arith.constant 0 : i32
    return %c0_i32, %c0_i32_0 : i32, i32
  }
}

module attributes {stable_mosaic.version = 11 : i64} {
  func.func @kernel(%arg0: i32, %arg1: memref<32x256xbf16, #tpu.memory_space<vmem>>, %arg2: memref<256x128xbf16, #tpu.memory_space<vmem>>, %arg3: memref<32x1xf32, #tpu.memory_space<vmem>>, %arg4: memref<32x1xf32, #tpu.memory_space<vmem>>, %arg5: memref<32x128xbf16, #tpu.memory_space<vmem>>) attributes {dimension_semantics = [#tpu.dimension_semantics<arbitrary>], iteration_bounds = array<i64: 1>, scalar_prefetch = 0 : i64, scratch_operands = 0 : i64, tpu.core_type = #tpu.core_type<tc>, window_params = [{pipeline_mode = #tpu.pipeline_mode<synchronous>, transform_indices = @transform_0, window_bounds = array<i64: 32, 256>}, {pipeline_mode = #tpu.pipeline_mode<synchronous>, transform_indices = @transform_1, window_bounds = array<i64: 256, 128>}, {pipeline_mode = #tpu.pipeline_mode<synchronous>, transform_indices = @transform_2, window_bounds = array<i64: 32, 1>}, {pipeline_mode = #tpu.pipeline_mode<synchronous>, transform_indices = @transform_3, window_bounds = array<i64: 32, 1>}, {pipeline_mode = #tpu.pipeline_mode<synchronous>, transform_indices = @transform_4, window_bounds = array<i64: 32, 128>}]} {
    %c0 = arith.constant 0 : index
    %c0_0 = arith.constant 0 : index
    %0 = vector.load %arg1[%c0, %c0_0] : memref<32x256xbf16, #tpu.memory_space<vmem>>, vector<32x256xbf16>
    %c0_1 = arith.constant 0 : index
    %c0_2 = arith.constant 0 : index
    %1 = vector.load %arg2[%c0_1, %c0_2] : memref<256x128xbf16, #tpu.memory_space<vmem>>, vector<256x128xbf16>
    %cst = arith.constant dense<0.000000e+00> : vector<32x128xf32>
    %2 = tpu.matmul %0, %1, %cst {dimension_numbers = #tpu.dot_dimension_numbers<[1], [0], [0], [1], [0, 0, 1, 1], [], []>} : vector<32x256xbf16>, vector<256x128xbf16>, vector<32x128xf32> -> vector<32x128xf32>
    %cst_3 = arith.constant dense<0.000000e+00> : vector<32xf32>
    %3 = vector.multi_reduction <add>, %2, %cst_3 [1] : vector<32x128xf32> to vector<32xf32>
    %4 = vector.shape_cast %3 : vector<32xf32> to vector<32x1xf32>
    %cst_4 = arith.constant 7.812500e-03 : f32
    %5 = vector.broadcast %cst_4 : f32 to vector<32x1xf32>
    %6 = arith.mulf %4, %5 : vector<32x1xf32>
    %7 = vector.broadcast %6 : vector<32x1xf32> to vector<32x128xf32>
    %8 = arith.subf %2, %7 : vector<32x128xf32>
    %9 = arith.mulf %8, %8 : vector<32x128xf32>
    %cst_5 = arith.constant dense<0.000000e+00> : vector<32xf32>
    %10 = vector.multi_reduction <add>, %9, %cst_5 [1] : vector<32x128xf32> to vector<32xf32>
    %11 = vector.shape_cast %10 : vector<32xf32> to vector<32x1xf32>
    %cst_6 = arith.constant 7.812500e-03 : f32
    %12 = vector.broadcast %cst_6 : f32 to vector<32x1xf32>
    %13 = arith.mulf %11, %12 : vector<32x1xf32>
    %c0_7 = arith.constant 0 : index
    %c0_8 = arith.constant 0 : index
    %14 = vector.load %arg3[%c0_7, %c0_8] : memref<32x1xf32, #tpu.memory_space<vmem>>, vector<32x1xf32>
    %cst_9 = arith.constant 9.99999974E-6 : f32
    %15 = vector.broadcast %cst_9 : f32 to vector<32x1xf32>
    %16 = arith.addf %13, %15 : vector<32x1xf32>
    %17 = math.rsqrt %16 : vector<32x1xf32>
    %18 = arith.mulf %14, %17 : vector<32x1xf32>
    %19 = vector.broadcast %18 : vector<32x1xf32> to vector<32x128xf32>
    %20 = arith.mulf %8, %19 : vector<32x128xf32>
    %c0_10 = arith.constant 0 : index
    %c0_11 = arith.constant 0 : index
    %21 = vector.load %arg4[%c0_10, %c0_11] : memref<32x1xf32, #tpu.memory_space<vmem>>, vector<32x1xf32>
    %22 = vector.broadcast %21 : vector<32x1xf32> to vector<32x128xf32>
    %23 = arith.addf %20, %22 : vector<32x128xf32>
    %cst_12 = arith.constant 0.000000e+00 : f32
    %24 = vector.broadcast %cst_12 : f32 to vector<32x128xf32>
    %25 = arith.cmpf ogt, %23, %24 : vector<32x128xf32>
    %cst_13 = arith.constant 2.000000e-01 : f32
    %26 = vector.broadcast %cst_13 : f32 to vector<32x128xf32>
    %27 = arith.mulf %26, %23 : vector<32x128xf32>
    %28 = arith.select %25, %23, %27 : vector<32x128xi1>, vector<32x128xf32>
    %29 = arith.truncf %28 : vector<32x128xf32> to vector<32x128xbf16>
    %c0_14 = arith.constant 0 : index
    %c0_15 = arith.constant 0 : index
    %30 = vector.load %arg5[%c0_14, %c0_15] : memref<32x128xbf16, #tpu.memory_space<vmem>>, vector<32x128xbf16>
    tpu.vector_store %arg5[%c0_14, %c0_15], %29 {strides = array<i32>} : memref<32x128xbf16, #tpu.memory_space<vmem>>, vector<32x128xbf16>,
    return
  }
  func.func @transform_0(%arg0: i32) -> (i32, i32) {
    %c0_i32 = arith.constant 0 : i32
    %c0_i32_0 = arith.constant 0 : i32
    %c0_i32_1 = arith.constant 0 : i32
    return %c0_i32, %c0_i32_0 : i32, i32
  }
  func.func @transform_1(%arg0: i32) -> (i32, i32) {
    %c0_i32 = arith.constant 0 : i32
    %c0_i32_0 = arith.constant 0 : i32
    %c0_i32_1 = arith.constant 0 : i32
    return %c0_i32, %c0_i32_0 : i32, i32
  }
  func.func @transform_2(%arg0: i32) -> (i32, i32) {
    %c0_i32 = arith.constant 0 : i32
    %c0_i32_0 = arith.constant 0 : i32
    %c0_i32_1 = arith.constant 0 : i32
    return %c0_i32, %c0_i32_0 : i32, i32
  }
  func.func @transform_3(%arg0: i32) -> (i32, i32) {
    %c0_i32 = arith.constant 0 : i32
    %c0_i32_0 = arith.constant 0 : i32
    %c0_i32_1 = arith.constant 0 : i32
    return %c0_i32, %c0_i32_0 : i32, i32
  }
  func.func @transform_4(%arg0: i32) -> (i32, i32) {
    %c0_i32 = arith.constant 0 : i32
    %c0_i32_0 = arith.constant 0 : i32
    %c0_i32_1 = arith.constant 0 : i32
    return %c0_i32, %c0_i32_0 : i32, i32
  }
}

module attributes {stable_mosaic.version = 11 : i64} {
  func.func @kernel(%arg0: i32, %arg1: memref<64x512xbf16, #tpu.memory_space<vmem>>, %arg2: memref<512x32xbf16, #tpu.memory_space<vmem>>, %arg3: memref<64x1xf32, #tpu.memory_space<vmem>>, %arg4: memref<64x1xf32, #tpu.memory_space<vmem>>, %arg5: memref<64x32xbf16, #tpu.memory_space<vmem>>) attributes {dimension_semantics = [#tpu.dimension_semantics<arbitrary>], iteration_bounds = array<i64: 1>, scalar_prefetch = 0 : i64, scratch_operands = 0 : i64, tpu.core_type = #tpu.core_type<tc>, window_params = [{pipeline_mode = #tpu.pipeline_mode<synchronous>, transform_indices = @transform_0, window_bounds = array<i64: 64, 512>}, {pipeline_mode = #tpu.pipeline_mode<synchronous>, transform_indices = @transform_1, window_bounds = array<i64: 512, 32>}, {pipeline_mode = #tpu.pipeline_mode<synchronous>, transform_indices = @transform_2, window_bounds = array<i64: 64, 1>}, {pipeline_mode = #tpu.pipeline_mode<synchronous>, transform_indices = @transform_3, window_bounds = array<i64: 64, 1>}, {pipeline_mode = #tpu.pipeline_mode<synchronous>, transform_indices = @transform_4, window_bounds = array<i64: 64, 32>}]} {
    %c0 = arith.constant 0 : index
    %c0_0 = arith.constant 0 : index
    %0 = vector.load %arg1[%c0, %c0_0] : memref<64x512xbf16, #tpu.memory_space<vmem>>, vector<64x512xbf16>
    %c0_1 = arith.constant 0 : index
    %c0_2 = arith.constant 0 : index
    %1 = vector.load %arg2[%c0_1, %c0_2] : memref<512x32xbf16, #tpu.memory_space<vmem>>, vector<512x32xbf16>
    %cst = arith.constant dense<0.000000e+00> : vector<64x32xf32>
    %2 = tpu.matmul %0, %1, %cst {dimension_numbers = #tpu.dot_dimension_numbers<[1], [0], [0], [1], [0, 0, 1, 1], [], []>} : vector<64x512xbf16>, vector<512x32xbf16>, vector<64x32xf32> -> vector<64x32xf32>
    %cst_3 = arith.constant dense<0.000000e+00> : vector<64xf32>
    %3 = vector.multi_reduction <add>, %2, %cst_3 [1] : vector<64x32xf32> to vector<64xf32>
    %4 = vector.shape_cast %3 : vector<64xf32> to vector<64x1xf32>
    %cst_4 = arith.constant 3.125000e-02 : f32
    %5 = vector.broadcast %cst_4 : f32 to vector<64x1xf32>
    %6 = arith.mulf %4, %5 : vector<64x1xf32>
    %7 = vector.broadcast %6 : vector<64x1xf32> to vector<64x32xf32>
    %8 = arith.subf %2, %7 : vector<64x32xf32>
    %9 = arith.mulf %8, %8 : vector<64x32xf32>
    %cst_5 = arith.constant dense<0.000000e+00> : vector<64xf32>
    %10 = vector.multi_reduction <add>, %9, %cst_5 [1] : vector<64x32xf32> to vector<64xf32>
    %11 = vector.shape_cast %10 : vector<64xf32> to vector<64x1xf32>
    %cst_6 = arith.constant 3.125000e-02 : f32
    %12 = vector.broadcast %cst_6 : f32 to vector<64x1xf32>
    %13 = arith.mulf %11, %12 : vector<64x1xf32>
    %c0_7 = arith.constant 0 : index
    %c0_8 = arith.constant 0 : index
    %14 = vector.load %arg3[%c0_7, %c0_8] : memref<64x1xf32, #tpu.memory_space<vmem>>, vector<64x1xf32>
    %cst_9 = arith.constant 9.99999974E-6 : f32
    %15 = vector.broadcast %cst_9 : f32 to vector<64x1xf32>
    %16 = arith.addf %13, %15 : vector<64x1xf32>
    %17 = math.rsqrt %16 : vector<64x1xf32>
    %18 = arith.mulf %14, %17 : vector<64x1xf32>
    %19 = vector.broadcast %18 : vector<64x1xf32> to vector<64x32xf32>
    %20 = arith.mulf %8, %19 : vector<64x32xf32>
    %c0_10 = arith.constant 0 : index
    %c0_11 = arith.constant 0 : index
    %21 = vector.load %arg4[%c0_10, %c0_11] : memref<64x1xf32, #tpu.memory_space<vmem>>, vector<64x1xf32>
    %22 = vector.broadcast %21 : vector<64x1xf32> to vector<64x32xf32>
    %23 = arith.addf %20, %22 : vector<64x32xf32>
    %cst_12 = arith.constant 0.000000e+00 : f32
    %24 = vector.broadcast %cst_12 : f32 to vector<64x32xf32>
    %25 = arith.cmpf ogt, %23, %24 : vector<64x32xf32>
    %cst_13 = arith.constant 2.000000e-01 : f32
    %26 = vector.broadcast %cst_13 : f32 to vector<64x32xf32>
    %27 = arith.mulf %26, %23 : vector<64x32xf32>
    %28 = arith.select %25, %23, %27 : vector<64x32xi1>, vector<64x32xf32>
    %29 = arith.truncf %28 : vector<64x32xf32> to vector<64x32xbf16>
    %c0_14 = arith.constant 0 : index
    %c0_15 = arith.constant 0 : index
    %30 = vector.load %arg5[%c0_14, %c0_15] : memref<64x32xbf16, #tpu.memory_space<vmem>>, vector<64x32xbf16>
    tpu.vector_store %arg5[%c0_14, %c0_15], %29 {strides = array<i32>} : memref<64x32xbf16, #tpu.memory_space<vmem>>, vector<64x32xbf16>,
    return
  }
  func.func @transform_0(%arg0: i32) -> (i32, i32) {
    %c0_i32 = arith.constant 0 : i32
    %c0_i32_0 = arith.constant 0 : i32
    %c0_i32_1 = arith.constant 0 : i32
    return %c0_i32, %c0_i32_0 : i32, i32
  }
  func.func @transform_1(%arg0: i32) -> (i32, i32) {
    %c0_i32 = arith.constant 0 : i32
    %c0_i32_0 = arith.constant 0 : i32
    %c0_i32_1 = arith.constant 0 : i32
    return %c0_i32, %c0_i32_0 : i32, i32
  }
  func.func @transform_2(%arg0: i32) -> (i32, i32) {
    %c0_i32 = arith.constant 0 : i32
    %c0_i32_0 = arith.constant 0 : i32
    %c0_i32_1 = arith.constant 0 : i32
    return %c0_i32, %c0_i32_0 : i32, i32
  }
  func.func @transform_3(%arg0: i32) -> (i32, i32) {
    %c0_i32 = arith.constant 0 : i32
    %c0_i32_0 = arith.constant 0 : i32
    %c0_i32_1 = arith.constant 0 : i32
    return %c0_i32, %c0_i32_0 : i32, i32
  }
  func.func @transform_4(%arg0: i32) -> (i32, i32) {
    %c0_i32 = arith.constant 0 : i32
    %c0_i32_0 = arith.constant 0 : i32
    %c0_i32_1 = arith.constant 0 : i32
    return %c0_i32, %c0_i32_0 : i32, i32
  }
}

module attributes {stable_mosaic.version = 11 : i64} {
  func.func @kernel(%arg0: i32, %arg1: memref<16x1024xbf16, #tpu.memory_space<vmem>>, %arg2: memref<1024x2xbf16, #tpu.memory_space<vmem>>, %arg3: memref<16x1xf32, #tpu.memory_space<vmem>>, %arg4: memref<16x2xf32, #tpu.memory_space<vmem>>) attributes {dimension_semantics = [#tpu.dimension_semantics<arbitrary>], iteration_bounds = array<i64: 1>, scalar_prefetch = 0 : i64, scratch_operands = 0 : i64, tpu.core_type = #tpu.core_type<tc>, window_params = [{pipeline_mode = #tpu.pipeline_mode<synchronous>, transform_indices = @transform_0, window_bounds = array<i64: 16, 1024>}, {pipeline_mode = #tpu.pipeline_mode<synchronous>, transform_indices = @transform_1, window_bounds = array<i64: 1024, 2>}, {pipeline_mode = #tpu.pipeline_mode<synchronous>, transform_indices = @transform_2, window_bounds = array<i64: 16, 1>}, {pipeline_mode = #tpu.pipeline_mode<synchronous>, transform_indices = @transform_3, window_bounds = array<i64: 16, 2>}]} {
    %c0 = arith.constant 0 : index
    %c0_0 = arith.constant 0 : index
    %0 = vector.load %arg1[%c0, %c0_0] : memref<16x1024xbf16, #tpu.memory_space<vmem>>, vector<16x1024xbf16>
    %c0_1 = arith.constant 0 : index
    %c0_2 = arith.constant 0 : index
    %1 = vector.load %arg2[%c0_1, %c0_2] : memref<1024x2xbf16, #tpu.memory_space<vmem>>, vector<1024x2xbf16>
    %cst = arith.constant dense<0.000000e+00> : vector<16x2xf32>
    %2 = tpu.matmul %0, %1, %cst {dimension_numbers = #tpu.dot_dimension_numbers<[1], [0], [0], [1], [0, 0, 1, 1], [], []>} : vector<16x1024xbf16>, vector<1024x2xbf16>, vector<16x2xf32> -> vector<16x2xf32>
    %c0_3 = arith.constant 0 : index
    %c0_4 = arith.constant 0 : index
    %3 = vector.load %arg3[%c0_3, %c0_4] : memref<16x1xf32, #tpu.memory_space<vmem>>, vector<16x1xf32>
    %4 = vector.broadcast %3 : vector<16x1xf32> to vector<16x2xf32>
    %5 = arith.addf %2, %4 : vector<16x2xf32>
    %c0_5 = arith.constant 0 : index
    %c0_6 = arith.constant 0 : index
    %6 = vector.load %arg4[%c0_5, %c0_6] : memref<16x2xf32, #tpu.memory_space<vmem>>, vector<16x2xf32>
    tpu.vector_store %arg4[%c0_5, %c0_6], %5 {strides = array<i32>} : memref<16x2xf32, #tpu.memory_space<vmem>>, vector<16x2xf32>,
    return
  }
  func.func @transform_0(%arg0: i32) -> (i32, i32) {
    %c0_i32 = arith.constant 0 : i32
    %c0_i32_0 = arith.constant 0 : i32
    %c0_i32_1 = arith.constant 0 : i32
    return %c0_i32, %c0_i32_0 : i32, i32
  }
  func.func @transform_1(%arg0: i32) -> (i32, i32) {
    %c0_i32 = arith.constant 0 : i32
    %c0_i32_0 = arith.constant 0 : i32
    %c0_i32_1 = arith.constant 0 : i32
    return %c0_i32, %c0_i32_0 : i32, i32
  }
  func.func @transform_2(%arg0: i32) -> (i32, i32) {
    %c0_i32 = arith.constant 0 : i32
    %c0_i32_0 = arith.constant 0 : i32
    %c0_i32_1 = arith.constant 0 : i32
    return %c0_i32, %c0_i32_0 : i32, i32
  }
  func.func @transform_3(%arg0: i32) -> (i32, i32) {
    %c0_i32 = arith.constant 0 : i32
    %c0_i32_0 = arith.constant 0 : i32
    %c0_i32_1 = arith.constant 0 : i32
    return %c0_i32, %c0_i32_0 : i32, i32
  }
}

</mosaic_0001>

<bundles_post_ra>
// kernel: prior_vae_forward.5
= control target key start
LH: loop header
LB: loop body
LE: loop exit
PB: predicated region body
PF: predicated region fallthrough
CT: control target
= control target key end

     0   :  { %vm263_vm0 = vcmask 1041408   ;;  %v980_v3 = vmov 0   ;;  %vm259_vm1 = vcmask 293888   ;;  %s1219_s1 = inlined_call_operand.vmem [shape: bf16[36,2048], index: 1, kind: input, shape index: {}]   ;;  %s1220_s0 = inlined_call_operand.vmem [shape: bf16[8,36], index: 0, kind: input, shape index: {}]   ;;  %s1221_s2 = inlined_call_operand.vmem [shape: f32[8,1], index: 2, kind: input, shape index: {}]   ;;  %s1222_s3 = inlined_call_operand.vmem [shape: f32[8,1], index: 3, kind: input, shape index: {}]   ;;  %s1223_s4 = inlined_call_operand.vmem [shape: bf16[8,2048], index: 4, kind: output, shape index: {}]  }
   0x1   :  { %v51_v0 = vld [vmem:[%s1219_s1 + $0x100] sm:$0x33]  ;;  %v52_v1 = vld [vmem:[%s1219_s1 + $0x108] sm:$0x33]  ;;  %344 = vmatprep.mubr.bf16.mxu0 %v980_v3  ;;  %385 = vmatprep.mubr.bf16.mxu1 %v980_v3  ;;  %v53_v23 = vld [vmem:[%s1219_s1 + $0x110] sm:$0x33] }
   0x2   :  { %v35_v2 = vld [vmem:[%s1219_s1 + $0x80] sm:$0xff]  ;;  %v912_v4 = vcombine.high %v51_v0, %v51_v0  ;;  %v914_v5 = vcombine.high %v52_v1, %v52_v1  ;;  %v911_v6 = vcombine.low %v51_v0, %v51_v0  ;;  %v913_v7 = vcombine.low %v52_v1, %v52_v1  ;;  %v36_v9 = vld [vmem:[%s1219_s1 + $0x88] sm:$0xff]  ;;  %960 = vset.pattern.permute.xlu1 %v980_v3  ;;  %v54_v24 = vld [vmem:[%s1219_s1 + $0x118] sm:$0x33] }
   0x3   :  { %v43_v8 = vld [vmem:[%s1219_s1 + $0xc0] sm:$0xff]  ;;  %v44_v10 = vld [vmem:[%s1219_s1 + $0xc8] sm:$0xff]  ;;  %961 = vset.pattern.permute.xlu0 %v980_v3  ;;  %v916_v27 = vcombine.high %v53_v23, %v53_v23  ;;  %v918_v28 = vcombine.high %v54_v24, %v54_v24  ;;  %v915_v29 = vcombine.low %v53_v23, %v53_v23  ;;  %v917_v30 = vcombine.low %v54_v24, %v54_v24  ;;  %v37_v31 = vld [vmem:[%s1219_s1 + $0x90] sm:$0xff] }
   0x4   :  { %v896_v11 = vcombine.high %v35_v2, %v43_v8  ;;  %v898_v12 = vcombine.high %v36_v9, %v44_v10  ;;  %v19_v13 = vld [vmem:[%s1219_s1] sm:$0xff]  ;;  %v20_v15 = vld [vmem:[%s1219_s1 + $0x8] sm:$0xff]  ;;  %927 = vmatprep.subr.msk.bf16.mxu0 %vm263_vm0, %v912_v4  ;;  %929 = vmatprep.subr.msk.bf16.mxu1 %vm263_vm0, %v914_v5  ;;  %v265_v16 = vsel %vm263_vm0, %v911_v6, 0  ;;  %v271_v17 = vsel %vm263_vm0, %v913_v7, 0  ;;  %v45_v32 = vld [vmem:[%s1219_s1 + $0xd0] sm:$0xff] }
   0x5   :  { %v27_v14 = vld [vmem:[%s1219_s1 + $0x40] sm:$0xff]  ;;  %v28_v18 = vld [vmem:[%s1219_s1 + $0x48] sm:$0xff]  ;;  %323 = vmatpush1.bf16.msra.mxu0 %v265_v16  ;;  %364 = vmatpush1.bf16.msra.mxu1 %v271_v17  ;;  %v895_v19 = vcombine.low %v35_v2, %v43_v8  ;;  %v897_v20 = vcombine.low %v36_v9, %v44_v10  ;;  %v38_v33 = vld [vmem:[%s1219_s1 + $0x98] sm:$0xff]  ;;  %v277_v36 = vsel %vm263_vm0, %v915_v29, 0  ;;  %v283_v37 = vsel %vm263_vm0, %v917_v30, 0 }
   0x6   :  { %324 = vmatprep.subr.bf16.mxu0 %v896_v11  ;;  %365 = vmatprep.subr.bf16.mxu1 %v898_v12  ;;  %v880_v21 = vcombine.high %v19_v13, %v27_v14  ;;  %v882_v22 = vcombine.high %v20_v15, %v28_v18  ;;  %v879_v25 = vcombine.low %v19_v13, %v27_v14  ;;  %v46_v34 = vld [vmem:[%s1219_s1 + $0xd8] sm:$0xff]  ;;  %v1065_v35 = vld [vmem:[%s1220_s0] sm:$0xf]  ;;  %v21_v40 = vld [vmem:[%s1219_s1 + $0x10] sm:$0xff] }
   0x7   :  { %v881_v26 = vcombine.low %v20_v15, %v28_v18  ;;  %v900_v38 = vcombine.high %v37_v31, %v45_v32  ;;  %v902_v39 = vcombine.high %v38_v33, %v46_v34  ;;  %v29_v41 = vld [vmem:[%s1219_s1 + $0x50] sm:$0xff]  ;;  %v22_v42 = vld [vmem:[%s1219_s1 + $0x18] sm:$0xff]  ;;  %v899_v44 = vcombine.low %v37_v31, %v45_v32  ;;  %v55_v48 = vld [vmem:[%s1219_s1 + $0x120] sm:$0x33] }
   0x8   :  { %v30_v43 = vld [vmem:[%s1219_s1 + $0x58] sm:$0xff]  ;;  %v901_v45 = vcombine.low %v38_v33, %v46_v34  ;;  %v884_v46 = vcombine.high %v21_v40, %v29_v41  ;;  %v56_v49 = vld [vmem:[%s1219_s1 + $0x128] sm:$0x33]  ;;  %v883_v50 = vcombine.low %v21_v40, %v29_v41  ;;  %v920_v52 = vcombine.high %v55_v48, %v55_v48  ;;  %v39_v56 = vld [vmem:[%s1219_s1 + $0xa0] sm:$0xff] }
   0x9   :  { %325 = vmatpush1.bf16.msra.mxu0 %v895_v19  ;;  %366 = vmatpush1.bf16.msra.mxu1 %v897_v20  ;;  %v886_v47 = vcombine.high %v22_v42, %v30_v43  ;;  %v885_v51 = vcombine.low %v22_v42, %v30_v43  ;;  %v922_v53 = vcombine.high %v56_v49, %v56_v49  ;;  %v47_v57 = vld [vmem:[%s1219_s1 + $0xe0] sm:$0xff]  ;;  %v40_v58 = vld [vmem:[%s1219_s1 + $0xa8] sm:$0xff]  ;;  %v57_v9 = vld [vmem:[%s1219_s1 + $0x130] sm:$0x33] }
   0xa   :  { %326 = vmatprep.subr.bf16.mxu0 %v880_v21  ;;  %367 = vmatprep.subr.bf16.mxu1 %v882_v22  ;;  %v919_v54 = vcombine.low %v55_v48, %v55_v48  ;;  %v921_v55 = vcombine.low %v56_v49, %v56_v49  ;;  %v48_v59 = vld [vmem:[%s1219_s1 + $0xe8] sm:$0xff]  ;;  %v904_v62 = vcombine.high %v39_v56, %v47_v57  ;;  %v23_v0 = vld [vmem:[%s1219_s1 + $0x20] sm:$0xff]  ;;  %v58_v10 = vld [vmem:[%s1219_s1 + $0x138] sm:$0x33] }
   0xb   :  { %v906_v63 = vcombine.high %v40_v58, %v48_v59  ;;  %v31_v1 = vld [vmem:[%s1219_s1 + $0x60] sm:$0xff]  ;;  %v24_v2 = vld [vmem:[%s1219_s1 + $0x28] sm:$0xff]  ;;  %v903_v5 = vcombine.low %v39_v56, %v47_v57  ;;  %v905_v6 = vcombine.low %v40_v58, %v48_v59  ;;  %v924_v13 = vcombine.high %v57_v9, %v57_v9  ;;  %v41_v17 = vld [vmem:[%s1219_s1 + $0xb0] sm:$0xff] }
   0xc   :  { %v289_v60 = vsel %vm263_vm0, %v919_v54, 0  ;;  %v295_v61 = vsel %vm263_vm0, %v921_v55, 0  ;;  %v32_v4 = vld [vmem:[%s1219_s1 + $0x68] sm:$0xff]  ;;  %v888_v7 = vcombine.high %v23_v0, %v31_v1  ;;  %v887_v11 = vcombine.low %v23_v0, %v31_v1  ;;  %v49_v18 = vld [vmem:[%s1219_s1 + $0xf0] sm:$0xff]  ;;  %v42_v19 = vld [vmem:[%s1219_s1 + $0xb8] sm:$0xff] }
   0xd   :  { %327 = vmatpush1.bf16.msra.mxu0 %v879_v25  ;;  %368 = vmatpush1.bf16.msra.mxu1 %v881_v26  ;;  %v890_v8 = vcombine.high %v24_v2, %v32_v4  ;;  %v889_v12 = vcombine.low %v24_v2, %v32_v4  ;;  %v926_v14 = vcombine.high %v58_v10, %v58_v10  ;;  %v50_v20 = vld [vmem:[%s1219_s1 + $0xf8] sm:$0xff]  ;;  %v25_v25 = vld [vmem:[%s1219_s1 + $0x30] sm:$0xff] }
   0xe   :  { %931 = vmatprep.subr.msk.bf16.mxu0 %vm263_vm0, %v916_v27  ;;  %933 = vmatprep.subr.msk.bf16.mxu1 %vm263_vm0, %v918_v28  ;;  %v923_v15 = vcombine.low %v57_v9, %v57_v9  ;;  %v925_v16 = vcombine.low %v58_v10, %v58_v10  ;;  %v908_v23 = vcombine.high %v41_v17, %v49_v18  ;;  %v33_v26 = vld [vmem:[%s1219_s1 + $0x70] sm:$0xff]  ;;  %v26_v27 = vld [vmem:[%s1219_s1 + $0x38] sm:$0xff] }
   0xf   :  { %v910_v24 = vcombine.high %v42_v19, %v50_v20  ;;  %v34_v28 = vld [vmem:[%s1219_s1 + $0x78] sm:$0xff]  ;;  %v907_v29 = vcombine.low %v41_v17, %v49_v18  ;;  %v909_v30 = vcombine.low %v42_v19, %v50_v20  ;;  %v892_v31 = vcombine.high %v25_v25, %v33_v26 }
  0x10   :  { %928 = vmatmul.mubr.msk.bf16.vlgmr.msra.gmra.mxu0 %vm259_vm1, %v1065_v35  ;;  %930 = vmatmul.mubr.msk.bf16.vlgmr.msra.gmra.mxu1 %vm259_vm1, %v1065_v35  ;;  %v301_v21 = vsel %vm263_vm0, %v923_v15, 0  ;;  %v307_v22 = vsel %vm263_vm0, %v925_v16, 0  ;;  %v894_v32 = vcombine.high %v26_v27, %v34_v28  ;;  %v891_v33 = vcombine.low %v25_v25, %v33_v26 }
  0x11   :  { %405 = vmatpush1.bf16.msra.mxu0 %v277_v36  ;;  %446 = vmatpush1.bf16.msra.mxu1 %v283_v37  ;;  %v893_v34 = vcombine.low %v26_v27, %v34_v28 }
  0x12   :  { %406 = vmatprep.subr.bf16.mxu0 %v900_v38  ;;  %447 = vmatprep.subr.bf16.mxu1 %v902_v39 }
  0x13   :  { %426 = vmatprep.mubr.bf16.mxu0 %v980_v3  ;;  %467 = vmatprep.mubr.bf16.mxu1 %v980_v3 }
  0x15   :  { %407 = vmatpush1.bf16.msra.mxu0 %v899_v44  ;;  %448 = vmatpush1.bf16.msra.mxu1 %v901_v45 }
  0x16   :  { %408 = vmatprep.subr.bf16.mxu0 %v884_v46  ;;  %449 = vmatprep.subr.bf16.mxu1 %v886_v47 }
  0x19   :  { %409 = vmatpush1.bf16.msra.mxu0 %v883_v50  ;;  %450 = vmatpush1.bf16.msra.mxu1 %v885_v51 }
  0x1a   :  { %935 = vmatprep.subr.msk.bf16.mxu0 %vm263_vm0, %v920_v52  ;;  %937 = vmatprep.subr.msk.bf16.mxu1 %vm263_vm0, %v922_v53 }
  0x1c   :  { %932 = vmatmul.mubr.msk.bf16.vlgmr.msra.gmra.mxu0 %vm259_vm1, %v1065_v35  ;;  %934 = vmatmul.mubr.msk.bf16.vlgmr.msra.gmra.mxu1 %vm259_vm1, %v1065_v35 }
  0x1d   :  { %487 = vmatpush1.bf16.msra.mxu0 %v289_v60  ;;  %528 = vmatpush1.bf16.msra.mxu1 %v295_v61 }
  0x1e   :  { %488 = vmatprep.subr.bf16.mxu0 %v904_v62  ;;  %529 = vmatprep.subr.bf16.mxu1 %v906_v63 }
  0x1f   :  { %508 = vmatprep.mubr.bf16.mxu0 %v980_v3  ;;  %549 = vmatprep.mubr.bf16.mxu1 %v980_v3 }
  0x21   :  { %489 = vmatpush1.bf16.msra.mxu0 %v903_v5  ;;  %530 = vmatpush1.bf16.msra.mxu1 %v905_v6 }
  0x22   :  { %490 = vmatprep.subr.bf16.mxu0 %v888_v7  ;;  %531 = vmatprep.subr.bf16.mxu1 %v890_v8 }
  0x25   :  { %491 = vmatpush1.bf16.msra.mxu0 %v887_v11  ;;  %532 = vmatpush1.bf16.msra.mxu1 %v889_v12 }
  0x26   :  { %939 = vmatprep.subr.msk.bf16.mxu0 %vm263_vm0, %v924_v13  ;;  %941 = vmatprep.subr.msk.bf16.mxu1 %vm263_vm0, %v926_v14 }
  0x28   :  { %936 = vmatmul.mubr.msk.bf16.vlgmr.msra.gmra.mxu0 %vm259_vm1, %v1065_v35  ;;  %938 = vmatmul.mubr.msk.bf16.vlgmr.msra.gmra.mxu1 %vm259_vm1, %v1065_v35 }
  0x29   :  { %569 = vmatpush1.bf16.msra.mxu0 %v301_v21  ;;  %610 = vmatpush1.bf16.msra.mxu1 %v307_v22 }
  0x2a   :  { %570 = vmatprep.subr.bf16.mxu0 %v908_v23  ;;  %611 = vmatprep.subr.bf16.mxu1 %v910_v24 }
  0x2b   :  { %590 = vmatprep.mubr.bf16.mxu0 %v980_v3  ;;  %631 = vmatprep.mubr.bf16.mxu1 %v980_v3 }
  0x2d   :  { %571 = vmatpush1.bf16.msra.mxu0 %v907_v29  ;;  %612 = vmatpush1.bf16.msra.mxu1 %v909_v30 }
  0x2e   :  { %572 = vmatprep.subr.bf16.mxu0 %v892_v31  ;;  %613 = vmatprep.subr.bf16.mxu1 %v894_v32 }
  0x31   :  { %573 = vmatpush1.bf16.msra.mxu0 %v891_v33  ;;  %614 = vmatpush1.bf16.msra.mxu1 %v893_v34 }
  0x34   :  { %940 = vmatmul.mubr.msk.bf16.vlgmr.msra.gmra.mxu0 %vm259_vm1, %v1065_v35  ;;  %942 = vmatmul.mubr.msk.bf16.vlgmr.msra.gmra.mxu1 %vm259_vm1, %v1065_v35 }
  0xd0   :  { %v346_v36 = vpop.f32.mrf.mxu0  ;;  %v387_v37 = vpop.f32.mrf.mxu1 }
  0xd2   :  { %v348_v38 = vpop.f32.mrf.mxu0  ;;  %v389_v39 = vpop.f32.mrf.mxu1 }
  0xd3   :  { %v640_v40 = vadd.f32 %v348_v38, %v346_v36 }
  0xd4   :  { %v350_v3 = vpop.f32.mrf.mxu0  ;;  %v391_v41 = vpop.f32.mrf.mxu1 }
  0xd5   :  { %v641_v44 = vadd.f32 %v640_v40, %v387_v37 }
  0xd6   :  { %v351_v42 = vpop.f32.mrf.mxu0  ;;  %v392_v43 = vpop.f32.mrf.mxu1 }
  0xd7   :  { %v642_v45 = vadd.f32 %v641_v44, %v389_v39 }
  0xdc   :  { %v428_v46 = vpop.f32.mrf.mxu0  ;;  %v469_v47 = vpop.f32.mrf.mxu1 }
  0xdd   :  { %v643_v48 = vadd.f32 %v642_v45, %v428_v46 }
  0xde   :  { %v430_v49 = vpop.f32.mrf.mxu0  ;;  %v471_v50 = vpop.f32.mrf.mxu1 }
  0xdf   :  { %v644_v51 = vadd.f32 %v643_v48, %v430_v49 }
  0xe0   :  { %v432_v52 = vpop.f32.mrf.mxu0  ;;  %v473_v53 = vpop.f32.mrf.mxu1 }
  0xe1   :  { %v645_v55 = vadd.f32 %v644_v51, %v469_v47 }
  0xe2   :  { %v433_v35 = vpop.f32.mrf.mxu0  ;;  %v474_v54 = vpop.f32.mrf.mxu1 }
  0xe3   :  { %v646_v56 = vadd.f32 %v645_v55, %v471_v50 }
  0xe8   :  { %v510_v57 = vpop.f32.mrf.mxu0  ;;  %v551_v58 = vpop.f32.mrf.mxu1 }
  0xe9   :  { %v647_v59 = vadd.f32 %v646_v56, %v510_v57 }
  0xea   :  { %v512_v60 = vpop.f32.mrf.mxu0  ;;  %v553_v61 = vpop.f32.mrf.mxu1 }
  0xeb   :  { %v648_v62 = vadd.f32 %v647_v59, %v512_v60 }
  0xec   :  { %v514_v63 = vpop.f32.mrf.mxu0  ;;  %v555_v0 = vpop.f32.mrf.mxu1 }
  0xed   :  { %v649_v4 = vadd.f32 %v648_v62, %v551_v58 }
  0xee   :  { %v515_v1 = vpop.f32.mrf.mxu0  ;;  %v556_v2 = vpop.f32.mrf.mxu1 }
  0xef   :  { %v650_v5 = vadd.f32 %v649_v4, %v553_v61 }
  0xf4   :  { %v592_v6 = vpop.f32.mrf.mxu0  ;;  %v633_v7 = vpop.f32.mrf.mxu1 }
  0xf5   :  { %v651_v8 = vadd.f32 %v650_v5, %v592_v6 }
  0xf6   :  { %v594_v9 = vpop.f32.mrf.mxu0  ;;  %v635_v10 = vpop.f32.mrf.mxu1 }
  0xf7   :  { %v652_v11 = vadd.f32 %v651_v8, %v594_v9 }
  0xf8   :  { %v596_v12 = vpop.f32.mrf.mxu0  ;;  %v637_v13 = vpop.f32.mrf.mxu1 }
  0xf9   :  { %v653_v14 = vadd.f32 %v652_v11, %v633_v7 }
  0xfa   :  { %v597_v15 = vpop.f32.mrf.mxu0  ;;  %v638_v16 = vpop.f32.mrf.mxu1 }
  0xfb   :  { %v654_v17 = vadd.f32 %v653_v14, %v635_v10 }
  0xfd   :  { %655 = vadd.xlane.f32.xlu0 %v654_v17 }
 0x186   :  { %v656_v18 = vpop.xlane.xlu0 %655 }
 0x187   :  { %v657_v19 = vmul.f32 0.00048828125, %v656_v18 }
 0x189   :  { %v658_v20 = vsub.f32 %v346_v36, %v657_v19  ;;  %v659_v21 = vsub.f32 %v348_v38, %v657_v19  ;;  %v660_v22 = vsub.f32 %v387_v37, %v657_v19  ;;  %v661_v25 = vsub.f32 %v389_v39, %v657_v19 }
 0x18a   :  { %v662_v26 = vsub.f32 %v428_v46, %v657_v19  ;;  %v663_v29 = vsub.f32 %v430_v49, %v657_v19  ;;  %v664_v32 = vsub.f32 %v469_v47, %v657_v19  ;;  %v665_v40 = vsub.f32 %v471_v50, %v657_v19 }
 0x18b   :  { %v674_v23 = vmul.f32 %v658_v20, %v658_v20  ;;  %v675_v24 = vmul.f32 %v659_v21, %v659_v21  ;;  %v676_v27 = vmul.f32 %v660_v22, %v660_v22  ;;  %v677_v30 = vmul.f32 %v661_v25, %v661_v25 }
 0x18c   :  { %v678_v33 = vmul.f32 %v662_v26, %v662_v26  ;;  %v679_v3 = vmul.f32 %v663_v29, %v663_v29  ;;  %v666_v42 = vsub.f32 %v510_v57, %v657_v19  ;;  %v680_v43 = vmul.f32 %v664_v32, %v664_v32 }
 0x18d   :  { %v690_v28 = vadd.f32 %v675_v24, %v674_v23  ;;  %v667_v38 = vsub.f32 %v512_v60, %v657_v19  ;;  %v681_v37 = vmul.f32 %v665_v40, %v665_v40  ;;  %v668_v45 = vsub.f32 %v551_v58, %v657_v19 }
 0x18e   :  { %v682_v39 = vmul.f32 %v666_v42, %v666_v42  ;;  %v669_v48 = vsub.f32 %v553_v61, %v657_v19  ;;  %v670_v52 = vsub.f32 %v592_v6, %v657_v19  ;;  %v671_v35 = vsub.f32 %v594_v9, %v657_v19  ;;  %v708_v6 = vld [vmem:[%s1221_s2] sm:$0xff] }
 0x18f   :  { %v691_v31 = vadd.f32 %v690_v28, %v676_v27  ;;  %v683_v51 = vmul.f32 %v667_v38, %v667_v38  ;;  %v684_v53 = vmul.f32 %v668_v45, %v668_v45  ;;  %v672_v55 = vsub.f32 %v633_v7, %v657_v19  ;;  %v733_v9 = vld [vmem:[%s1222_s3] sm:$0xff] }
 0x190   :  { %v685_v54 = vmul.f32 %v669_v48, %v669_v48  ;;  %v686_v56 = vmul.f32 %v670_v52, %v670_v52  ;;  %v673_v59 = vsub.f32 %v635_v10, %v657_v19  ;;  %v687_v62 = vmul.f32 %v671_v35, %v671_v35 }
 0x191   :  { %v692_v34 = vadd.f32 %v691_v31, %v677_v30  ;;  %v688_v63 = vmul.f32 %v672_v55, %v672_v55 }
 0x192   :  { %v689_v58 = vmul.f32 %v673_v59, %v673_v59 }
 0x193   :  { %v693_v41 = vadd.f32 %v692_v34, %v678_v33 }
 0x195   :  { %v694_v36 = vadd.f32 %v693_v41, %v679_v3 }
 0x197   :  { %v695_v44 = vadd.f32 %v694_v36, %v680_v43 }
 0x199   :  { %v696_v46 = vadd.f32 %v695_v44, %v681_v37 }
 0x19b   :  { %v697_v49 = vadd.f32 %v696_v46, %v682_v39 }
 0x19d   :  { %v698_v47 = vadd.f32 %v697_v49, %v683_v51 }
 0x19f   :  { %v699_v50 = vadd.f32 %v698_v47, %v684_v53 }
 0x1a1   :  { %v700_v57 = vadd.f32 %v699_v50, %v685_v54 }
 0x1a3   :  { %v701_v60 = vadd.f32 %v700_v57, %v686_v56 }
 0x1a5   :  { %v702_v0 = vadd.f32 %v701_v60, %v687_v62 }
 0x1a7   :  { %v703_v1 = vadd.f32 %v702_v0, %v688_v63 }
 0x1a9   :  { %v704_v2 = vadd.f32 %v703_v1, %v689_v58 }
 0x1ab   :  { %705 = vadd.xlane.f32.xlu0 %v704_v2 }
 0x234   :  { %v706_v61 = vpop.xlane.xlu0 %705 }
 0x235   :  { %v707_v4 = vmul.f32 0.00048828125, %v706_v61 }
 0x237   :  { %v709_v5 = vadd.f32 1e-05, %v707_v4 }
 0x239   :  { %978 = vrsqrt.f32 %v709_v5 }
 0x246   :  { %v979_v7 = vpop.eup %978 }
 0x247   :  { %v711_v8 = vmul.f32 %v979_v7, %v708_v6 }
 0x249   :  { %714 = vperm.xlu1 %960, %v711_v8  }
 0x24d   :  { %736 = vperm.xlu1 %960, %v733_v9  }
 0x2c4   :  { %v715_v10 = vpop.permute.xlu1 %714 }
 0x2c5   :  { %v717_v11 = vmul.f32 %v715_v10, %v658_v20  ;;  %v718_v12 = vmul.f32 %v715_v10, %v659_v21  ;;  %v719_v13 = vmul.f32 %v715_v10, %v660_v22  ;;  %v720_v14 = vmul.f32 %v715_v10, %v661_v25 }
 0x2c6   :  { %v721_v15 = vmul.f32 %v715_v10, %v662_v26  ;;  %v722_v16 = vmul.f32 %v715_v10, %v663_v29  ;;  %v723_v17 = vmul.f32 %v715_v10, %v664_v32  ;;  %v724_v18 = vmul.f32 %v715_v10, %v665_v40 }
 0x2c7   :  { %v725_v19 = vmul.f32 %v715_v10, %v666_v42  ;;  %v726_v23 = vmul.f32 %v715_v10, %v667_v38  ;;  %v727_v24 = vmul.f32 %v715_v10, %v668_v45  ;;  %v728_v27 = vmul.f32 %v715_v10, %v669_v48 }
 0x2c8   :  { %v729_v28 = vmul.f32 %v715_v10, %v670_v52  ;;  %v730_v30 = vmul.f32 %v715_v10, %v671_v35  ;;  %v731_v31 = vmul.f32 %v715_v10, %v672_v55  ;;  %v732_v33 = vmul.f32 %v715_v10, %v673_v59  ;;  %v737_v34 = vpop.permute.xlu1 %736 }
 0x2c9   :  { %v739_v3 = vadd.f32 %v737_v34, %v717_v11  ;;  %v740_v41 = vadd.f32 %v737_v34, %v718_v12  ;;  %v741_v43 = vadd.f32 %v737_v34, %v719_v13  ;;  %v742_v20 = vadd.f32 %v737_v34, %v720_v14 }
 0x2ca   :  { %v743_v21 = vadd.f32 %v737_v34, %v721_v15  ;;  %v744_v22 = vadd.f32 %v737_v34, %v722_v16  ;;  %v745_v25 = vadd.f32 %v737_v34, %v723_v17  ;;  %v746_v26 = vadd.f32 %v737_v34, %v724_v18 }
 0x2cb   :  { %v747_v29 = vadd.f32 %v737_v34, %v725_v19  ;;  %v748_v32 = vadd.f32 %v737_v34, %v726_v23  ;;  %v749_v40 = vadd.f32 %v737_v34, %v727_v24  ;;  %v750_v42 = vadd.f32 %v737_v34, %v728_v27 }
 0x2cc   :  { %v751_v36 = vadd.f32 %v737_v34, %v729_v28  ;;  %v752_v38 = vadd.f32 %v737_v34, %v730_v30  ;;  %v753_v37 = vadd.f32 %v737_v34, %v731_v31  ;;  %v754_v44 = vadd.f32 %v737_v34, %v732_v33 }
 0x2cd   :  { %vm755_vm2 = vcmp.gt.f32.partialorder %v739_v3, 0.0  ;;  %vm756_vm3 = vcmp.gt.f32.partialorder %v740_v41, 0.0  ;;  %vm757_vm4 = vcmp.gt.f32.partialorder %v741_v43, 0.0  ;;  %vm758_vm5 = vcmp.gt.f32.partialorder %v742_v20, 0.0 }
 0x2ce   :  { %vm759_vm6 = vcmp.gt.f32.partialorder %v743_v21, 0.0  ;;  %vm760_vm7 = vcmp.gt.f32.partialorder %v744_v22, 0.0  ;;  %vm761_vm8 = vcmp.gt.f32.partialorder %v745_v25, 0.0  ;;  %vm762_vm9 = vcmp.gt.f32.partialorder %v746_v26, 0.0 }
 0x2cf   :  { %vm763_vm10 = vcmp.gt.f32.partialorder %v747_v29, 0.0  ;;  %vm764_vm11 = vcmp.gt.f32.partialorder %v748_v32, 0.0  ;;  %vm765_vm12 = vcmp.gt.f32.partialorder %v749_v40, 0.0  ;;  %vm766_vm13 = vcmp.gt.f32.partialorder %v750_v42, 0.0 }
 0x2d0   :  { %vm767_vm14 = vcmp.gt.f32.partialorder %v751_v36, 0.0  ;;  %vm768_vm15 = vcmp.gt.f32.partialorder %v752_v38, 0.0  ;;  %vm769_vm0 = vcmp.gt.f32.partialorder %v753_v37, 0.0  ;;  %vm770_vm1 = vcmp.gt.f32.partialorder %v754_v44, 0.0 }
 0x2d1   :  { %v771_v45 = vmul.f32 0.2, %v739_v3  ;;  %v772_v39 = vmul.f32 0.2, %v740_v41  ;;  %v773_v46 = vmul.f32 0.2, %v741_v43 }
 0x2d2   :  { %v774_v48 = vmul.f32 0.2, %v742_v20  ;;  %v775_v51 = vmul.f32 0.2, %v743_v21  ;;  %v776_v49 = vmul.f32 0.2, %v744_v22 }
 0x2d3   :  { %v777_v52 = vmul.f32 0.2, %v745_v25  ;;  %v778_v53 = vmul.f32 0.2, %v746_v26  ;;  %v779_v47 = vmul.f32 0.2, %v747_v29  ;;  %v787_v35 = vsel %vm755_vm2, %v739_v3, %v771_v45 }
 0x2d4   :  { %v780_v54 = vmul.f32 0.2, %v748_v32  ;;  %v781_v50 = vmul.f32 0.2, %v749_v40  ;;  %v782_v55 = vmul.f32 0.2, %v750_v42  ;;  %v788_v56 = vsel %vm756_vm3, %v740_v41, %v772_v39 }
 0x2d5   :  { %v783_v57 = vmul.f32 0.2, %v751_v36  ;;  %v784_v59 = vmul.f32 0.2, %v752_v38  ;;  %v785_v62 = vmul.f32 0.2, %v753_v37  ;;  %v789_v60 = vsel %vm757_vm4, %v741_v43, %v773_v46 }
 0x2d6   :  { %v786_v63 = vmul.f32 0.2, %v754_v44  ;;  %v790_v0 = vsel %vm758_vm5, %v742_v20, %v774_v48  ;;  %v791_v58 = vsel %vm759_vm6, %v743_v21, %v775_v51  ;;  %v792_v1 = vsel %vm760_vm7, %v744_v22, %v776_v49 }
 0x2d7   :  { %v793_v2 = vsel %vm761_vm8, %v745_v25, %v777_v52  ;;  %v794_v61 = vsel %vm762_vm9, %v746_v26, %v778_v53  ;;  %v795_v4 = vsel %vm763_vm10, %v747_v29, %v779_v47  ;;  %v796_v5 = vsel %vm764_vm11, %v748_v32, %v780_v54 }
 0x2d8   :  { %v797_v6 = vsel %vm765_vm12, %v749_v40, %v781_v50  ;;  %v798_v7 = vsel %vm766_vm13, %v750_v42, %v782_v55  ;;  %v799_v8 = vsel %vm767_vm14, %v751_v36, %v783_v57  ;;  %v800_v9 = vsel %vm768_vm15, %v752_v38, %v784_v59 }
 0x2d9   :  { %v801_v10 = vsel %vm769_vm0, %v753_v37, %v785_v62  ;;  %v802_v11 = vsel %vm770_vm1, %v754_v44, %v786_v63  ;;  %v951_v12 = vpack.c.bf16 %v788_v56, %v787_v35  ;;  %v952_v13 = vpack.c.bf16 %v790_v0, %v789_v60 }
 0x2da   :  { %v953_v14 = vpack.c.bf16 %v792_v1, %v791_v58  ;;  %v954_v15 = vpack.c.bf16 %v794_v61, %v793_v2  ;;  %v955_v16 = vpack.c.bf16 %v796_v5, %v795_v4  ;;  %v956_v17 = vpack.c.bf16 %v798_v7, %v797_v6 }
 0x2db   :  { %v957_v18 = vpack.c.bf16 %v800_v9, %v799_v8  ;;  %v958_v19 = vpack.c.bf16 %v802_v11, %v801_v10  ;;  %867 = vst [vmem:[%s1223_s4] sm:$0xff] %v951_v12  ;;  %868 = vst [vmem:[%s1223_s4 + $0x8] sm:$0xff] %v952_v13 }
 0x2dc   :  { %869 = vst [vmem:[%s1223_s4 + $0x10] sm:$0xff] %v953_v14  ;;  %870 = vst [vmem:[%s1223_s4 + $0x18] sm:$0xff] %v954_v15 }
 0x2dd   :  { %871 = vst [vmem:[%s1223_s4 + $0x20] sm:$0xff] %v955_v16  ;;  %872 = vst [vmem:[%s1223_s4 + $0x28] sm:$0xff] %v956_v17 }
 0x2de   :  { %873 = vst [vmem:[%s1223_s4 + $0x30] sm:$0xff] %v957_v18  ;;  %874 = vst [vmem:[%s1223_s4 + $0x38] sm:$0xff] %v958_v19 }

// kernel: prior_vae_forward.6
= control target key start
LH: loop header
LB: loop body
LE: loop exit
PB: predicated region body
PF: predicated region fallthrough
CT: control target
= control target key end

     0   :  { %v543_v1 = vmov 0   ;;  %s692_s1 = inlined_call_operand.vmem [shape: bf16[128,512], index: 1, kind: input, shape index: {}]   ;;  %s693_s0 = inlined_call_operand.vmem [shape: bf16[16,128], index: 0, kind: input, shape index: {}]   ;;  %s694_s3 = inlined_call_operand.vmem [shape: f32[16,1], index: 3, kind: input, shape index: {}]   ;;  %s695_s2 = inlined_call_operand.vmem [shape: f32[16,1], index: 2, kind: input, shape index: {}]   ;;  %s696_s4 = inlined_call_operand.vmem [shape: bf16[16,512], index: 4, kind: output, shape index: {}]  }
   0x1   :  { %v490_v0 = vld [vmem:[%s692_s1 + $0xe4] ss:$16 sps:$4 sm:$0xff]   ;;  %250 = vmatprep.mubr.bf16.mxu0 %v543_v1  ;;  %293 = vmatprep.mubr.bf16.mxu1 %v543_v1  ;;  %v492_v2 = vld [vmem:[%s692_s1 + $0xec] ss:$16 sps:$4 sm:$0xff]   ;;  %v494_v3 = vld [vmem:[%s692_s1 + $0xe0] ss:$16 sps:$4 sm:$0xff]  }
   0x2   :  { %489 = vset.pattern.permute.xlu1 %v543_v1  ;;  %488 = vset.pattern.permute.xlu0 %v543_v1  ;;  %v495_v4 = vld [vmem:[%s692_s1 + $0xe8] ss:$16 sps:$4 sm:$0xff]   ;;  %v496_v5 = vld [vmem:[%s692_s1 + $0xc4] ss:$16 sps:$4 sm:$0xff]   ;;  %v498_v6 = vld [vmem:[%s692_s1 + $0xcc] ss:$16 sps:$4 sm:$0xff]  }
   0x3   :  { %218 = vmatprep.subr.bf16.mxu0 %v490_v0  ;;  %261 = vmatprep.subr.bf16.mxu1 %v492_v2  ;;  %v500_v7 = vld [vmem:[%s692_s1 + $0xc0] ss:$16 sps:$4 sm:$0xff]   ;;  %v501_v8 = vld [vmem:[%s692_s1 + $0xc8] ss:$16 sps:$4 sm:$0xff]   ;;  %v502_v9 = vld [vmem:[%s692_s1 + $0xa4] ss:$16 sps:$4 sm:$0xff]  }
   0x4   :  { %219 = vmatpush1.bf16.msra.mxu0 %v494_v3  ;;  %262 = vmatpush1.bf16.msra.mxu1 %v495_v4  ;;  %v504_v10 = vld [vmem:[%s692_s1 + $0xac] ss:$16 sps:$4 sm:$0xff]   ;;  %v506_v11 = vld [vmem:[%s692_s1 + $0xa0] ss:$16 sps:$4 sm:$0xff]   ;;  %v507_v12 = vld [vmem:[%s692_s1 + $0xa8] ss:$16 sps:$4 sm:$0xff]  }
   0x5   :  { %220 = vmatprep.subr.bf16.mxu0 %v496_v5  ;;  %263 = vmatprep.subr.bf16.mxu1 %v498_v6  ;;  %v508_v13 = vld [vmem:[%s692_s1 + $0x84] ss:$16 sps:$4 sm:$0xff]   ;;  %v510_v14 = vld [vmem:[%s692_s1 + $0x8c] ss:$16 sps:$4 sm:$0xff]   ;;  %v512_v15 = vld [vmem:[%s692_s1 + $0x80] ss:$16 sps:$4 sm:$0xff]  }
   0x6   :  { %v513_v16 = vld [vmem:[%s692_s1 + $0x88] ss:$16 sps:$4 sm:$0xff]   ;;  %v514_v17 = vld [vmem:[%s692_s1 + $0x64] ss:$16 sps:$4 sm:$0xff]   ;;  %v516_v18 = vld [vmem:[%s692_s1 + $0x6c] ss:$16 sps:$4 sm:$0xff]  }
   0x7   :  { %v518_v19 = vld [vmem:[%s692_s1 + $0x60] ss:$16 sps:$4 sm:$0xff]   ;;  %v519_v20 = vld [vmem:[%s692_s1 + $0x68] ss:$16 sps:$4 sm:$0xff]   ;;  %v520_v21 = vld [vmem:[%s692_s1 + $0x44] ss:$16 sps:$4 sm:$0xff]  }
   0x8   :  { %221 = vmatpush1.bf16.msra.mxu0 %v500_v7  ;;  %264 = vmatpush1.bf16.msra.mxu1 %v501_v8  ;;  %v522_v22 = vld [vmem:[%s692_s1 + $0x4c] ss:$16 sps:$4 sm:$0xff]   ;;  %v524_v23 = vld [vmem:[%s692_s1 + $0x40] ss:$16 sps:$4 sm:$0xff]   ;;  %v525_v24 = vld [vmem:[%s692_s1 + $0x48] ss:$16 sps:$4 sm:$0xff]  }
   0x9   :  { %222 = vmatprep.subr.bf16.mxu0 %v502_v9  ;;  %265 = vmatprep.subr.bf16.mxu1 %v504_v10  ;;  %v526_v25 = vld [vmem:[%s692_s1 + $0x24] ss:$16 sps:$4 sm:$0xff]   ;;  %v528_v26 = vld [vmem:[%s692_s1 + $0x2c] ss:$16 sps:$4 sm:$0xff]   ;;  %v530_v27 = vld [vmem:[%s692_s1 + $0x20] ss:$16 sps:$4 sm:$0xff]  }
   0xa   :  { %v531_v28 = vld [vmem:[%s692_s1 + $0x28] ss:$16 sps:$4 sm:$0xff]   ;;  %v532_v29 = vld [vmem:[%s692_s1 + $0x4] ss:$16 sps:$4 sm:$0xff]   ;;  %v534_v30 = vld [vmem:[%s692_s1 + $0xc] ss:$16 sps:$4 sm:$0xff]  }
   0xb   :  { %v536_v31 = vld [vmem:[%s692_s1] ss:$16 sps:$4 sm:$0xff]   ;;  %v537_v32 = vld [vmem:[%s692_s1 + $0x8] ss:$16 sps:$4 sm:$0xff]  }
   0xc   :  { %223 = vmatpush1.bf16.msra.mxu0 %v506_v11  ;;  %266 = vmatpush1.bf16.msra.mxu1 %v507_v12  ;;  %v538_v33 = vld [vmem:[%s693_s0] sm:$0xff]  }
   0xd   :  { %224 = vmatprep.subr.bf16.mxu0 %v508_v13  ;;  %267 = vmatprep.subr.bf16.mxu1 %v510_v14  ;;  %v370_v10 = vld [vmem:[%s694_s3] sm:$0xff] }
  0x10   :  { %225 = vmatpush1.bf16.msra.mxu0 %v512_v15  ;;  %268 = vmatpush1.bf16.msra.mxu1 %v513_v16 }
  0x11   :  { %226 = vmatprep.subr.bf16.mxu0 %v514_v17  ;;  %269 = vmatprep.subr.bf16.mxu1 %v516_v18  ;;  %v344_v17 = vld [vmem:[%s695_s2] sm:$0xff] }
  0x14   :  { %227 = vmatpush1.bf16.msra.mxu0 %v518_v19  ;;  %270 = vmatpush1.bf16.msra.mxu1 %v519_v20  ;;  %v345_v20 = vld [vmem:[%s695_s2 + $0x8] sm:$0xff] }
  0x15   :  { %228 = vmatprep.subr.bf16.mxu0 %v520_v21  ;;  %271 = vmatprep.subr.bf16.mxu1 %v522_v22 }
  0x18   :  { %229 = vmatpush1.bf16.msra.mxu0 %v524_v23  ;;  %272 = vmatpush1.bf16.msra.mxu1 %v525_v24  ;;  %v371_v23 = vld [vmem:[%s694_s3 + $0x8] sm:$0xff] }
  0x19   :  { %230 = vmatprep.subr.bf16.mxu0 %v526_v25  ;;  %273 = vmatprep.subr.bf16.mxu1 %v528_v26 }
  0x1c   :  { %231 = vmatpush1.bf16.msra.mxu0 %v530_v27  ;;  %274 = vmatpush1.bf16.msra.mxu1 %v531_v28 }
  0x1d   :  { %232 = vmatprep.subr.bf16.mxu0 %v532_v29  ;;  %275 = vmatprep.subr.bf16.mxu1 %v534_v30 }
  0x20   :  { %233 = vmatpush1.bf16.msra.mxu0 %v536_v31  ;;  %276 = vmatpush1.bf16.msra.mxu1 %v537_v32 }
  0x23   :  { %251 = vmatmul.mubr.bf16.vlgmr.msra.gmra.mxu0 %v538_v33  ;;  %294 = vmatmul.mubr.bf16.vlgmr.msra.gmra.mxu1 %v538_v33 }
  0xe3   :  { %v252_v34 = vpop.f32.mrf.mxu0  ;;  %v295_v35 = vpop.f32.mrf.mxu1 }
  0xe5   :  { %v254_v36 = vpop.f32.mrf.mxu0  ;;  %v297_v37 = vpop.f32.mrf.mxu1 }
  0xe6   :  { %v304_v38 = vadd.f32 %v254_v36, %v252_v34 }
  0xe7   :  { %v256_v39 = vpop.f32.mrf.mxu0  ;;  %v299_v41 = vpop.f32.mrf.mxu1 }
  0xe8   :  { %v305_v40 = vadd.f32 %v304_v38, %v295_v35 }
  0xe9   :  { %v258_v42 = vpop.f32.mrf.mxu0  ;;  %v301_v46 = vpop.f32.mrf.mxu1 }
  0xea   :  { %v309_v43 = vadd.f32 %v258_v42, %v256_v39  ;;  %v306_v44 = vadd.f32 %v305_v40, %v297_v37 }
  0xec   :  { %v310_v45 = vadd.f32 %v309_v43, %v299_v41  ;;  %307 = vadd.xlane.f32.xlu0 %v306_v44 }
  0xee   :  { %v311_v47 = vadd.f32 %v310_v45, %v301_v46 }
  0xf0   :  { %312 = vadd.xlane.f32.xlu0 %v311_v47 }
 0x175   :  { %v308_v48 = vpop.xlane.xlu0 %307 }
 0x176   :  { %v314_v49 = vmul.f32 0.001953125, %v308_v48 }
 0x178   :  { %v316_v50 = vsub.f32 %v252_v34, %v314_v49  ;;  %v317_v51 = vsub.f32 %v254_v36, %v314_v49  ;;  %v318_v52 = vsub.f32 %v295_v35, %v314_v49  ;;  %v319_v54 = vsub.f32 %v297_v37, %v314_v49 }
 0x179   :  { %v313_v53 = vpop.xlane.xlu0 %312 }
 0x17a   :  { %v315_v55 = vmul.f32 0.001953125, %v313_v53  ;;  %v324_v56 = vmul.f32 %v316_v50, %v316_v50  ;;  %v325_v57 = vmul.f32 %v317_v51, %v317_v51  ;;  %v326_v58 = vmul.f32 %v318_v52, %v318_v52 }
 0x17b   :  { %v327_v63 = vmul.f32 %v319_v54, %v319_v54 }
 0x17c   :  { %v320_v59 = vsub.f32 %v256_v39, %v315_v55  ;;  %v321_v60 = vsub.f32 %v258_v42, %v315_v55  ;;  %v332_v61 = vadd.f32 %v325_v57, %v324_v56  ;;  %v322_v62 = vsub.f32 %v299_v41, %v315_v55 }
 0x17d   :  { %v323_v1 = vsub.f32 %v301_v46, %v315_v55 }
 0x17e   :  { %v333_v0 = vadd.f32 %v332_v61, %v326_v58  ;;  %v328_v2 = vmul.f32 %v320_v59, %v320_v59  ;;  %v329_v3 = vmul.f32 %v321_v60, %v321_v60  ;;  %v330_v5 = vmul.f32 %v322_v62, %v322_v62 }
 0x17f   :  { %v331_v7 = vmul.f32 %v323_v1, %v323_v1 }
 0x180   :  { %v334_v4 = vadd.f32 %v333_v0, %v327_v63  ;;  %v337_v6 = vadd.f32 %v329_v3, %v328_v2 }
 0x182   :  { %335 = vadd.xlane.f32.xlu1 %v334_v4  ;;  %v338_v8 = vadd.f32 %v337_v6, %v330_v5 }
 0x184   :  { %v339_v9 = vadd.f32 %v338_v8, %v331_v7 }
 0x186   :  { %340 = vadd.xlane.f32.xlu1 %v339_v9 }
 0x197   :  { %374 = vperm.xlu1 %489, %v370_v10  }
 0x20b   :  { %v336_v11 = vpop.xlane.xlu1 %335 }
 0x20c   :  { %v342_v12 = vmul.f32 0.001953125, %v336_v11 }
 0x20e   :  { %v346_v13 = vadd.f32 1e-05, %v342_v12 }
 0x20f   :  { %v341_v14 = vpop.xlane.xlu1 %340 }
 0x210   :  { %539 = vrsqrt.f32 %v346_v13  ;;  %v343_v15 = vmul.f32 0.001953125, %v341_v14 }
 0x212   :  { %v347_v16 = vadd.f32 1e-05, %v343_v15 }
 0x213   :  { %v375_v24 = vpop.permute.xlu1 %374 }
 0x214   :  { %541 = vrsqrt.f32 %v347_v16 }
 0x21d   :  { %v540_v18 = vpop.eup %539 }
 0x21e   :  { %v350_v19 = vmul.f32 %v540_v18, %v344_v17 }
 0x220   :  { %354 = vperm.xlu0 %488, %v350_v19  }
 0x221   :  { %v542_v21 = vpop.eup %541 }
 0x222   :  { %v351_v22 = vmul.f32 %v542_v21, %v345_v20 }
 0x224   :  { %359 = vperm.xlu1 %489, %v351_v22  }
 0x228   :  { %379 = vperm.xlu1 %489, %v371_v23  }
 0x29b   :  { %v355_v25 = vpop.permute.xlu0 %354 }
 0x29c   :  { %v362_v26 = vmul.f32 %v355_v25, %v316_v50  ;;  %v363_v27 = vmul.f32 %v355_v25, %v317_v51  ;;  %v364_v28 = vmul.f32 %v355_v25, %v318_v52  ;;  %v365_v29 = vmul.f32 %v355_v25, %v319_v54 }
 0x29e   :  { %v382_v30 = vadd.f32 %v375_v24, %v362_v26  ;;  %v383_v31 = vadd.f32 %v375_v24, %v363_v27  ;;  %v384_v32 = vadd.f32 %v375_v24, %v364_v28  ;;  %v385_v33 = vadd.f32 %v375_v24, %v365_v29 }
 0x29f   :  { %v360_v34 = vpop.permute.xlu1 %359 }
 0x2a0   :  { %vm390_vm0 = vcmp.gt.f32.partialorder %v382_v30, 0.0  ;;  %vm391_vm1 = vcmp.gt.f32.partialorder %v383_v31, 0.0  ;;  %vm392_vm2 = vcmp.gt.f32.partialorder %v384_v32, 0.0  ;;  %vm393_vm3 = vcmp.gt.f32.partialorder %v385_v33, 0.0 }
 0x2a1   :  { %v398_v35 = vmul.f32 0.2, %v382_v30  ;;  %v399_v36 = vmul.f32 0.2, %v383_v31  ;;  %v400_v37 = vmul.f32 0.2, %v384_v32  ;;  %v366_v39 = vmul.f32 %v360_v34, %v320_v59 }
 0x2a2   :  { %v401_v38 = vmul.f32 0.2, %v385_v33  ;;  %v367_v40 = vmul.f32 %v360_v34, %v321_v60  ;;  %v368_v41 = vmul.f32 %v360_v34, %v322_v62  ;;  %v369_v45 = vmul.f32 %v360_v34, %v323_v1 }
 0x2a3   :  { %v406_v42 = vsel %vm390_vm0, %v382_v30, %v398_v35  ;;  %v407_v43 = vsel %vm391_vm1, %v383_v31, %v399_v36  ;;  %v408_v44 = vsel %vm392_vm2, %v384_v32, %v400_v37  ;;  %v380_v46 = vpop.permute.xlu1 %379 }
 0x2a4   :  { %v409_v47 = vsel %vm393_vm3, %v385_v33, %v401_v38  ;;  %v483_v48 = vpack.c.bf16 %v407_v43, %v406_v42  ;;  %v386_v49 = vadd.f32 %v380_v46, %v366_v39  ;;  %v387_v50 = vadd.f32 %v380_v46, %v367_v40 }
 0x2a5   :  { %v484_v51 = vpack.c.bf16 %v409_v47, %v408_v44  ;;  %v388_v52 = vadd.f32 %v380_v46, %v368_v41  ;;  %v389_v53 = vadd.f32 %v380_v46, %v369_v45 }
 0x2a6   :  { %438 = vst [vmem:[%s696_s4] sm:$0xff] %v483_v48  ;;  %vm394_vm4 = vcmp.gt.f32.partialorder %v386_v49, 0.0  ;;  %vm395_vm5 = vcmp.gt.f32.partialorder %v387_v50, 0.0  ;;  %v402_v54 = vmul.f32 0.2, %v386_v49  ;;  %v403_v55 = vmul.f32 0.2, %v387_v50 }
 0x2a7   :  { %439 = vst [vmem:[%s696_s4 + $0x8] sm:$0xff] %v484_v51  ;;  %vm396_vm6 = vcmp.gt.f32.partialorder %v388_v52, 0.0  ;;  %vm397_vm7 = vcmp.gt.f32.partialorder %v389_v53, 0.0  ;;  %v404_v56 = vmul.f32 0.2, %v388_v52 }
 0x2a8   :  { %v405_v57 = vmul.f32 0.2, %v389_v53  ;;  %v410_v58 = vsel %vm394_vm4, %v386_v49, %v402_v54  ;;  %v411_v59 = vsel %vm395_vm5, %v387_v50, %v403_v55 }
 0x2a9   :  { %v412_v60 = vsel %vm396_vm6, %v388_v52, %v404_v56  ;;  %v485_v62 = vpack.c.bf16 %v411_v59, %v410_v58 }
 0x2aa   :  { %v413_v61 = vsel %vm397_vm7, %v389_v53, %v405_v57 }
 0x2ab   :  { %v486_v63 = vpack.c.bf16 %v413_v61, %v412_v60  ;;  %440 = vst [vmem:[%s696_s4 + $0x10] sm:$0xff] %v485_v62 }
 0x2ad   :  { %441 = vst [vmem:[%s696_s4 + $0x18] sm:$0xff] %v486_v63 }

// kernel: prior_vae_forward.7
= control target key start
LH: loop header
LB: loop body
LE: loop exit
PB: predicated region body
PF: predicated region fallthrough
CT: control target
= control target key end

     0   :  { %v471_v48 = vmov 0   ;;  %s607_s1 = inlined_call_operand.vmem [shape: bf16[256,128], index: 1, kind: input, shape index: {}]   ;;  %s608_s0 = inlined_call_operand.vmem [shape: bf16[32,256], index: 0, kind: input, shape index: {}]   ;;  %s609_s3 = inlined_call_operand.vmem [shape: f32[32,1], index: 3, kind: input, shape index: {}]   ;;  %s610_s2 = inlined_call_operand.vmem [shape: f32[32,1], index: 2, kind: input, shape index: {}]   ;;  %s611_s4 = inlined_call_operand.vmem [shape: bf16[32,128], index: 4, kind: output, shape index: {}]  }
   0x1   :  { %v441_v0 = vld [vmem:[%s607_s1 + $0x78] sm:$0xff]   ;;  %v443_v2 = vld [vmem:[%s607_s1 + $0x70] sm:$0xff]   ;;  %v445_v4 = vld [vmem:[%s607_s1 + $0x68] sm:$0xff]   ;;  %440 = vset.pattern.permute.xlu1 %v471_v48  ;;  %439 = vset.pattern.permute.xlu0 %v471_v48 }
   0x2   :  { %v442_v1 = vld [vmem:[%s607_s1 + $0x38] sm:$0xff]   ;;  %394 = vmatprep.subr.bf16.mxu0 %v441_v0  ;;  %422 = vmatprep.subr.bf16.mxu1 %v441_v0  ;;  %v444_v3 = vld [vmem:[%s607_s1 + $0x30] sm:$0xff]   ;;  %v446_v5 = vld [vmem:[%s607_s1 + $0x28] sm:$0xff]  }
   0x3   :  { %395 = vmatpush3.bf16.msra.mxu0 %v442_v1  ;;  %430 = vmatpush3.bf16.msra.mxu1 %v442_v1  ;;  %v447_v6 = vld [vmem:[%s607_s1 + $0x60] sm:$0xff]   ;;  %v449_v8 = vld [vmem:[%s607_s1 + $0x58] sm:$0xff]   ;;  %v451_v10 = vld [vmem:[%s607_s1 + $0x50] sm:$0xff]  }
   0x4   :  { %396 = vmatprep.subr.bf16.mxu0 %v443_v2  ;;  %423 = vmatprep.subr.bf16.mxu1 %v443_v2  ;;  %v448_v7 = vld [vmem:[%s607_s1 + $0x20] sm:$0xff]   ;;  %v450_v9 = vld [vmem:[%s607_s1 + $0x18] sm:$0xff]   ;;  %v452_v13 = vld [vmem:[%s607_s1 + $0x10] sm:$0xff]  }
   0x5   :  { %v459_v11 = vld [vmem:[%s608_s0 + $0x4] ss:$8 sps:$4 sm:$0xff]   ;;  %v462_v12 = vld [vmem:[%s608_s0 + $0x14] ss:$8 sps:$4 sm:$0xff]   ;;  %v457_v18 = vld [vmem:[%s608_s0] ss:$8 sps:$4 sm:$0xff]  }
   0x6   :  { %v453_v14 = vld [vmem:[%s607_s1 + $0x48] sm:$0xff]   ;;  %202 = vmatprep.mubr.bf16.mxu0 %v459_v11  ;;  %210 = vmatprep.mubr.bf16.mxu1 %v462_v12  ;;  %v455_v16 = vld [vmem:[%s607_s1 + $0x40] sm:$0xff]   ;;  %v460_v19 = vld [vmem:[%s608_s0 + $0x10] ss:$8 sps:$4 sm:$0xff]  }
   0x7   :  { %397 = vmatpush3.bf16.msra.mxu0 %v444_v3  ;;  %431 = vmatpush3.bf16.msra.mxu1 %v444_v3  ;;  %v454_v15 = vld [vmem:[%s607_s1 + $0x8] sm:$0xff]   ;;  %v456_v17 = vld [vmem:[%s607_s1] sm:$0xff]   ;;  %v293_v51 = vld [vmem:[%s609_s3 + $0x10] sm:$0xff] }
   0x8   :  { %398 = vmatprep.subr.bf16.mxu0 %v445_v4  ;;  %424 = vmatprep.subr.bf16.mxu1 %v445_v4  ;;  %v291_v49 = vld [vmem:[%s609_s3] sm:$0xff]  ;;  %v292_v50 = vld [vmem:[%s609_s3 + $0x8] sm:$0xff]  ;;  %v253_v3 = vld [vmem:[%s610_s2 + $0x10] sm:$0xff] }
   0x9   :  { %v251_v0 = vld [vmem:[%s610_s2] sm:$0xff]  ;;  %v294_v12 = vld [vmem:[%s609_s3 + $0x18] sm:$0xff] }
   0xb   :  { %399 = vmatpush3.bf16.msra.mxu0 %v446_v5  ;;  %432 = vmatpush3.bf16.msra.mxu1 %v446_v5 }
   0xc   :  { %400 = vmatprep.subr.bf16.mxu0 %v447_v6  ;;  %425 = vmatprep.subr.bf16.mxu1 %v447_v6 }
   0xf   :  { %401 = vmatpush3.bf16.msra.mxu0 %v448_v7  ;;  %433 = vmatpush3.bf16.msra.mxu1 %v448_v7  ;;  %v252_v7 = vld [vmem:[%s610_s2 + $0x8] sm:$0xff] }
  0x10   :  { %402 = vmatprep.subr.bf16.mxu0 %v449_v8  ;;  %426 = vmatprep.subr.bf16.mxu1 %v449_v8 }
  0x13   :  { %403 = vmatpush3.bf16.msra.mxu0 %v450_v9  ;;  %434 = vmatpush3.bf16.msra.mxu1 %v450_v9 }
  0x14   :  { %404 = vmatprep.subr.bf16.mxu0 %v451_v10  ;;  %427 = vmatprep.subr.bf16.mxu1 %v451_v10  ;;  %v254_v10 = vld [vmem:[%s610_s2 + $0x18] sm:$0xff] }
  0x17   :  { %405 = vmatpush3.bf16.msra.mxu0 %v452_v13  ;;  %435 = vmatpush3.bf16.msra.mxu1 %v452_v13 }
  0x18   :  { %406 = vmatprep.subr.bf16.mxu0 %v453_v14  ;;  %428 = vmatprep.subr.bf16.mxu1 %v453_v14 }
  0x1b   :  { %407 = vmatpush3.bf16.msra.mxu0 %v454_v15  ;;  %436 = vmatpush3.bf16.msra.mxu1 %v454_v15 }
  0x1c   :  { %408 = vmatprep.subr.bf16.mxu0 %v455_v16  ;;  %429 = vmatprep.subr.bf16.mxu1 %v455_v16 }
  0x1f   :  { %409 = vmatpush3.bf16.msra.mxu0 %v456_v17  ;;  %437 = vmatpush3.bf16.msra.mxu1 %v456_v17 }
  0x22   :  { %203 = vmatmul.mubr.bf16.vlgmr.msra.gmra.mxu0 %v457_v18  ;;  %211 = vmatmul.mubr.bf16.vlgmr.msra.gmra.mxu1 %v460_v19 }
  0xe2   :  { %v410_v20 = vpop.f32.mrf.mxu0  ;;  %v416_v21 = vpop.f32.mrf.mxu1 }
  0xe4   :  { %v411_v22 = vpop.f32.mrf.mxu0  ;;  %v417_v23 = vpop.f32.mrf.mxu1 }
  0xe5   :  { %v412_v24 = vadd.f32 %v411_v22, %v410_v20  ;;  %v418_v25 = vadd.f32 %v417_v23, %v416_v21 }
  0xe6   :  { %v413_v26 = vpop.f32.mrf.mxu0  ;;  %v419_v27 = vpop.f32.mrf.mxu1 }
  0xe7   :  { %223 = vadd.xlane.f32.xlu1 %v418_v25  ;;  %219 = vadd.xlane.f32.xlu0 %v412_v24 }
  0xe8   :  { %v414_v28 = vpop.f32.mrf.mxu0  ;;  %v420_v29 = vpop.f32.mrf.mxu1 }
  0xe9   :  { %v415_v30 = vadd.f32 %v414_v28, %v413_v26  ;;  %v421_v31 = vadd.f32 %v420_v29, %v419_v27 }
  0xeb   :  { %225 = vadd.xlane.f32.xlu1 %v421_v31  ;;  %221 = vadd.xlane.f32.xlu0 %v415_v30 }
 0x170   :  { %v224_v32 = vpop.xlane.xlu1 %223  ;;  %v220_v33 = vpop.xlane.xlu0 %219 }
 0x171   :  { %v229_v34 = vmul.f32 0.0078125, %v224_v32  ;;  %v227_v35 = vmul.f32 0.0078125, %v220_v33 }
 0x173   :  { %v557_v36 = vsub.f32 %v412_v24, %v227_v35  ;;  %v559_v39 = vsub.f32 %v418_v25, %v229_v34 }
 0x174   :  { %v226_v37 = vpop.xlane.xlu1 %225  ;;  %v222_v38 = vpop.xlane.xlu0 %221 }
 0x175   :  { %v230_v40 = vmul.f32 0.0078125, %v226_v37  ;;  %v228_v41 = vmul.f32 0.0078125, %v222_v38  ;;  %v235_v42 = vmul.f32 %v557_v36, %v557_v36  ;;  %v237_v45 = vmul.f32 %v559_v39, %v559_v39 }
 0x177   :  { %v563_v43 = vsub.f32 %v415_v30, %v228_v41  ;;  %239 = vadd.xlane.f32.xlu0 %v235_v42  ;;  %v565_v44 = vsub.f32 %v421_v31, %v230_v40 }
 0x179   :  { %v236_v46 = vmul.f32 %v563_v43, %v563_v43  ;;  %v238_v47 = vmul.f32 %v565_v44, %v565_v44 }
 0x17b   :  { %243 = vadd.xlane.f32.xlu0 %v237_v45  ;;  %241 = vadd.xlane.f32.xlu1 %v236_v46 }
 0x17f   :  { %245 = vadd.xlane.f32.xlu1 %v238_v47 }
 0x190   :  { %297 = vperm.xlu1 %440, %v291_v49  }
 0x194   :  { %302 = vperm.xlu1 %440, %v292_v50  }
 0x198   :  { %307 = vperm.xlu1 %440, %v293_v51  }
 0x200   :  { %v240_v52 = vpop.xlane.xlu0 %239 }
 0x201   :  { %v247_v53 = vmul.f32 0.0078125, %v240_v52 }
 0x203   :  { %v255_v54 = vadd.f32 1e-05, %v247_v53 }
 0x204   :  { %v242_v55 = vpop.xlane.xlu1 %241  ;;  %v244_v56 = vpop.xlane.xlu0 %243 }
 0x205   :  { %463 = vrsqrt.f32 %v255_v54  ;;  %v248_v57 = vmul.f32 0.0078125, %v242_v55  ;;  %v249_v58 = vmul.f32 0.0078125, %v244_v56 }
 0x207   :  { %v257_v59 = vadd.f32 1e-05, %v249_v58  ;;  %v256_v60 = vadd.f32 1e-05, %v248_v57 }
 0x208   :  { %v246_v61 = vpop.xlane.xlu1 %245 }
 0x209   :  { %v250_v62 = vmul.f32 0.0078125, %v246_v61  ;;  %465 = vrsqrt.f32 %v257_v59 }
 0x20a   :  { %467 = vrsqrt.f32 %v256_v60 }
 0x20b   :  { %v258_v63 = vadd.f32 1e-05, %v250_v62 }
 0x20c   :  { %v298_v13 = vpop.permute.xlu1 %297 }
 0x20d   :  { %469 = vrsqrt.f32 %v258_v63 }
 0x210   :  { %v303_v14 = vpop.permute.xlu1 %302 }
 0x212   :  { %v464_v1 = vpop.eup %463 }
 0x213   :  { %v263_v2 = vmul.f32 %v464_v1, %v251_v0 }
 0x214   :  { %v308_v15 = vpop.permute.xlu1 %307 }
 0x215   :  { %269 = vperm.xlu0 %439, %v263_v2  }
 0x216   :  { %v466_v4 = vpop.eup %465 }
 0x217   :  { %v265_v5 = vmul.f32 %v466_v4, %v253_v3  ;;  %v468_v6 = vpop.eup %467 }
 0x218   :  { %v264_v8 = vmul.f32 %v468_v6, %v252_v7 }
 0x219   :  { %279 = vperm.xlu1 %440, %v265_v5  }
 0x21a   :  { %v470_v9 = vpop.eup %469 }
 0x21b   :  { %v266_v11 = vmul.f32 %v470_v9, %v254_v10 }
 0x21d   :  { %274 = vperm.xlu1 %440, %v264_v8  }
 0x221   :  { %284 = vperm.xlu1 %440, %v266_v11  }
 0x225   :  { %312 = vperm.xlu1 %440, %v294_v12  }
 0x290   :  { %v270_v16 = vpop.permute.xlu0 %269 }
 0x291   :  { %v287_v17 = vmul.f32 %v270_v16, %v557_v36 }
 0x293   :  { %v315_v19 = vadd.f32 %v298_v13, %v287_v17 }
 0x294   :  { %v280_v18 = vpop.permute.xlu1 %279 }
 0x295   :  { %v289_v21 = vmul.f32 %v280_v18, %v559_v39  ;;  %v323_v23 = vmul.f32 0.2, %v315_v19  ;;  %vm319_vm0 = vcmp.gt.f32.partialorder %v315_v19, 0.0 }
 0x297   :  { %v317_v26 = vadd.f32 %v308_v15, %v289_v21  ;;  %v327_v28 = vsel %vm319_vm0, %v315_v19, %v323_v23 }
 0x298   :  { %v275_v20 = vpop.permute.xlu1 %274 }
 0x299   :  { %v288_v22 = vmul.f32 %v275_v20, %v563_v43  ;;  %v325_v33 = vmul.f32 0.2, %v317_v26  ;;  %vm321_vm2 = vcmp.gt.f32.partialorder %v317_v26, 0.0 }
 0x29b   :  { %v316_v24 = vadd.f32 %v303_v14, %v288_v22  ;;  %v329_v36 = vsel %vm321_vm2, %v317_v26, %v325_v33 }
 0x29c   :  { %v285_v25 = vpop.permute.xlu1 %284 }
 0x29d   :  { %vm320_vm1 = vcmp.gt.f32.partialorder %v316_v24, 0.0  ;;  %v324_v27 = vmul.f32 0.2, %v316_v24  ;;  %v290_v30 = vmul.f32 %v285_v25, %v565_v44 }
 0x29f   :  { %v328_v29 = vsel %vm320_vm1, %v316_v24, %v324_v27 }
 0x2a0   :  { %v386_v31 = vpack.c.bf16 %v328_v29, %v327_v28  ;;  %v313_v32 = vpop.permute.xlu1 %312 }
 0x2a1   :  { %v318_v34 = vadd.f32 %v313_v32, %v290_v30 }
 0x2a2   :  { %387 = vst [vmem:[%s611_s4] sm:$0xff] %v386_v31  }
 0x2a3   :  { %vm322_vm3 = vcmp.gt.f32.partialorder %v318_v34, 0.0  ;;  %v326_v35 = vmul.f32 0.2, %v318_v34 }
 0x2a5   :  { %v330_v37 = vsel %vm322_vm3, %v318_v34, %v326_v35 }
 0x2a6   :  { %v391_v38 = vpack.c.bf16 %v330_v37, %v329_v36 }
 0x2a8   :  { %393 = vst [vmem:[%s611_s4 + $0x8] sm:$0xff] %v391_v38  }

// kernel: prior_vae_forward.8
= control target key start
LH: loop header
LB: loop body
LE: loop exit
PB: predicated region body
PF: predicated region fallthrough
CT: control target
= control target key end

     0   :  { %vm500_vm0 = vcmask 261120   ;;  %vm773_vm2 = vcmask 257024   ;;  %s1315_s1 = inlined_call_operand.vmem [shape: bf16[512,32], index: 1, kind: input, shape index: {}]   ;;  %s1316_s0 = inlined_call_operand.vmem [shape: bf16[64,512], index: 0, kind: input, shape index: {}]   ;;  %s1317_s3 = inlined_call_operand.vmem [shape: f32[64,1], index: 3, kind: input, shape index: {}]   ;;  %s1318_s2 = inlined_call_operand.vmem [shape: f32[64,1], index: 2, kind: input, shape index: {}]   ;;  %s1319_s4 = inlined_call_operand.vmem [shape: bf16[64,32], index: 4, kind: output, shape index: {}]  }
   0x1   :  { %v933_v0 = vld [vmem:[%s1315_s1 + $0x78] sm:$0xff]   ;;  %v937_v4 = vld [vmem:[%s1315_s1 + $0x70] sm:$0xff]   ;;  %v941_v8 = vld [vmem:[%s1315_s1 + $0x68] sm:$0xff]  }
   0x2   :  { %v934_v1 = vld [vmem:[%s1315_s1 + $0xf8] sm:$0xff]   ;;  %850 = vmatprep.subr.bf16.mxu0 %v933_v0  ;;  %v938_v5 = vld [vmem:[%s1315_s1 + $0xf0] sm:$0xff]   ;;  %v942_v9 = vld [vmem:[%s1315_s1 + $0xe8] sm:$0xff]  }
   0x3   :  { %v935_v2 = vld [vmem:[%s1315_s1 + $0x38] sm:$0xff]   ;;  %890 = vmatprep.subr.bf16.mxu1 %v934_v1  ;;  %v939_v6 = vld [vmem:[%s1315_s1 + $0x30] sm:$0xff]   ;;  %v943_v10 = vld [vmem:[%s1315_s1 + $0x28] sm:$0xff]  }
   0x4   :  { %v936_v3 = vld [vmem:[%s1315_s1 + $0xb8] sm:$0xff]   ;;  %851 = vmatpush3.bf16.msra.mxu0 %v935_v2  ;;  %v940_v7 = vld [vmem:[%s1315_s1 + $0xb0] sm:$0xff]   ;;  %v944_v11 = vld [vmem:[%s1315_s1 + $0xa8] sm:$0xff]  }
   0x5   :  { %891 = vmatpush3.bf16.msra.mxu1 %v936_v3  ;;  %852 = vmatprep.subr.bf16.mxu0 %v937_v4  ;;  %v945_v12 = vld [vmem:[%s1315_s1 + $0x60] sm:$0xff]   ;;  %v949_v16 = vld [vmem:[%s1315_s1 + $0x58] sm:$0xff]   ;;  %v953_v20 = vld [vmem:[%s1315_s1 + $0x50] sm:$0xff]  }
   0x6   :  { %892 = vmatprep.subr.bf16.mxu1 %v938_v5  ;;  %v946_v13 = vld [vmem:[%s1315_s1 + $0xe0] sm:$0xff]   ;;  %v950_v17 = vld [vmem:[%s1315_s1 + $0xd8] sm:$0xff]   ;;  %v954_v21 = vld [vmem:[%s1315_s1 + $0xd0] sm:$0xff]  }
   0x7   :  { %v947_v14 = vld [vmem:[%s1315_s1 + $0x20] sm:$0xff]   ;;  %v951_v18 = vld [vmem:[%s1315_s1 + $0x18] sm:$0xff]   ;;  %v955_v22 = vld [vmem:[%s1315_s1 + $0x10] sm:$0xff]  }
   0x8   :  { %853 = vmatpush3.bf16.msra.mxu0 %v939_v6  ;;  %v948_v15 = vld [vmem:[%s1315_s1 + $0xa0] sm:$0xff]   ;;  %v952_v19 = vld [vmem:[%s1315_s1 + $0x98] sm:$0xff]   ;;  %v956_v23 = vld [vmem:[%s1315_s1 + $0x90] sm:$0xff]  }
   0x9   :  { %893 = vmatpush3.bf16.msra.mxu1 %v940_v7  ;;  %854 = vmatprep.subr.bf16.mxu0 %v941_v8  ;;  %v957_v24 = vld [vmem:[%s1315_s1 + $0x48] sm:$0xff]   ;;  %v961_v28 = vld [vmem:[%s1315_s1 + $0x40] sm:$0xff]  }
   0xa   :  { %894 = vmatprep.subr.bf16.mxu1 %v942_v9  ;;  %v958_v25 = vld [vmem:[%s1315_s1 + $0xc8] sm:$0xff]   ;;  %v962_v29 = vld [vmem:[%s1315_s1 + $0xc0] sm:$0xff]  }
   0xb   :  { %v959_v26 = vld [vmem:[%s1315_s1 + $0x8] sm:$0xff]   ;;  %v963_v30 = vld [vmem:[%s1315_s1] sm:$0xff]  }
   0xc   :  { %855 = vmatpush3.bf16.msra.mxu0 %v943_v10  ;;  %v960_v27 = vld [vmem:[%s1315_s1 + $0x88] sm:$0xff]   ;;  %v964_v31 = vld [vmem:[%s1315_s1 + $0x80] sm:$0xff]  }
   0xd   :  { %895 = vmatpush3.bf16.msra.mxu1 %v944_v11  ;;  %856 = vmatprep.subr.bf16.mxu0 %v945_v12  ;;  %v965_v32 = vld [vmem:[%s1316_s0] ss:$16 sps:$4 sm:$0xff]   ;;  %v967_v33 = vld [vmem:[%s1316_s0 + $0x4] ss:$16 sps:$4 sm:$0xff]   ;;  %v968_v34 = vld [vmem:[%s1316_s0 + $0x8] ss:$16 sps:$4 sm:$0xff]  }
   0xe   :  { %896 = vmatprep.subr.bf16.mxu1 %v946_v13  ;;  %v970_v35 = vld [vmem:[%s1316_s0 + $0xc] ss:$16 sps:$4 sm:$0xff]   ;;  %402 = vmatprep.mubr.bf16.mxu0 %v967_v33  ;;  %v971_v36 = vld [vmem:[%s1316_s0 + $0x24] ss:$16 sps:$4 sm:$0xff]   ;;  %v975_v38 = vld [vmem:[%s1316_s0 + $0x20] ss:$16 sps:$4 sm:$0xff]  }
   0xf   :  { %467 = vmatprep.mubr.bf16.mxu1 %v970_v35  ;;  %v973_v37 = vld [vmem:[%s1316_s0 + $0x2c] ss:$16 sps:$4 sm:$0xff]   ;;  %v976_v39 = vld [vmem:[%s1316_s0 + $0x28] ss:$16 sps:$4 sm:$0xff]   ;;  %v977_v40 = vld [vmem:[%s1316_s0 + $0x44] ss:$16 sps:$4 sm:$0xff]  }
  0x10   :  { %857 = vmatpush3.bf16.msra.mxu0 %v947_v14  ;;  %v979_v41 = vld [vmem:[%s1316_s0 + $0x4c] ss:$16 sps:$4 sm:$0xff]   ;;  %v981_v42 = vld [vmem:[%s1316_s0 + $0x40] ss:$16 sps:$4 sm:$0xff]   ;;  %v982_v43 = vld [vmem:[%s1316_s0 + $0x48] ss:$16 sps:$4 sm:$0xff]  }
  0x11   :  { %897 = vmatpush3.bf16.msra.mxu1 %v948_v15  ;;  %858 = vmatprep.subr.bf16.mxu0 %v949_v16  ;;  %v983_v44 = vld [vmem:[%s1316_s0 + $0x64] ss:$16 sps:$4 sm:$0xff]   ;;  %v985_v45 = vld [vmem:[%s1316_s0 + $0x6c] ss:$16 sps:$4 sm:$0xff]   ;;  %v987_v46 = vld [vmem:[%s1316_s0 + $0x60] ss:$16 sps:$4 sm:$0xff]  }
  0x12   :  { %898 = vmatprep.subr.bf16.mxu1 %v950_v17  ;;  %v988_v47 = vld [vmem:[%s1316_s0 + $0x68] ss:$16 sps:$4 sm:$0xff]  }
  0x14   :  { %859 = vmatpush3.bf16.msra.mxu0 %v951_v18 }
  0x15   :  { %899 = vmatpush3.bf16.msra.mxu1 %v952_v19  ;;  %860 = vmatprep.subr.bf16.mxu0 %v953_v20 }
  0x16   :  { %900 = vmatprep.subr.bf16.mxu1 %v954_v21 }
  0x18   :  { %861 = vmatpush3.bf16.msra.mxu0 %v955_v22 }
  0x19   :  { %901 = vmatpush3.bf16.msra.mxu1 %v956_v23  ;;  %862 = vmatprep.subr.bf16.mxu0 %v957_v24 }
  0x1a   :  { %902 = vmatprep.subr.bf16.mxu1 %v958_v25 }
  0x1c   :  { %863 = vmatpush3.bf16.msra.mxu0 %v959_v26 }
  0x1d   :  { %903 = vmatpush3.bf16.msra.mxu1 %v960_v27  ;;  %864 = vmatprep.subr.bf16.mxu0 %v961_v28 }
  0x1e   :  { %904 = vmatprep.subr.bf16.mxu1 %v962_v29 }
  0x20   :  { %865 = vmatpush3.bf16.msra.mxu0 %v963_v30 }
  0x21   :  { %905 = vmatpush3.bf16.msra.mxu1 %v964_v31 }
  0x23   :  { %403 = vmatmul.mubr.bf16.vlgmr.msra.gmra.mxu0 %v965_v32 }
  0x24   :  { %468 = vmatmul.mubr.bf16.vlgmr.msra.gmra.mxu1 %v968_v34  ;;  %410 = vmatprep.mubr.bf16.mxu0 %v971_v36 }
  0x25   :  { %475 = vmatprep.mubr.bf16.mxu1 %v973_v37 }
  0x2b   :  { %411 = vmatmul.mubr.bf16.gmra.mxu0 %v975_v38 }
  0x2c   :  { %476 = vmatmul.mubr.bf16.gmra.mxu1 %v976_v39  ;;  %418 = vmatprep.mubr.bf16.mxu0 %v977_v40 }
  0x2d   :  { %483 = vmatprep.mubr.bf16.mxu1 %v979_v41 }
  0x33   :  { %419 = vmatmul.mubr.bf16.gmra.mxu0 %v981_v42 }
  0x34   :  { %484 = vmatmul.mubr.bf16.gmra.mxu1 %v982_v43  ;;  %426 = vmatprep.mubr.bf16.mxu0 %v983_v44 }
  0x35   :  { %491 = vmatprep.mubr.bf16.mxu1 %v985_v45 }
  0x3b   :  { %427 = vmatmul.mubr.bf16.gmra.mxu0 %v987_v46 }
  0x3c   :  { %492 = vmatmul.mubr.bf16.gmra.mxu1 %v988_v47 }
  0xe3   :  { %v866_v48 = vpop.f32.mrf.mxu0 }
  0xe4   :  { %v906_v49 = vpop.f32.mrf.mxu1 }
  0xe5   :  { %v867_v50 = vpop.f32.mrf.mxu0 }
  0xe6   :  { %v868_v51 = vadd.f32 %v867_v50, %v866_v48  ;;  %v907_v52 = vpop.f32.mrf.mxu1 }
  0xe7   :  { %v908_v53 = vadd.f32 %v907_v52, %v906_v49  ;;  %v869_v54 = vpop.f32.mrf.mxu0 }
  0xe8   :  { %v909_v55 = vpop.f32.mrf.mxu1 }
  0xe9   :  { %v870_v56 = vpop.f32.mrf.mxu0  ;;  %v1175_v57 = vadd.f32 %v908_v53, %v868_v51 }
  0xea   :  { %v871_v58 = vadd.f32 %v870_v56, %v869_v54  ;;  %v910_v59 = vpop.f32.mrf.mxu1 }
  0xeb   :  { %v911_v60 = vadd.f32 %v910_v59, %v909_v55  ;;  %v872_v61 = vpop.f32.mrf.mxu0  ;;  %v501_v62 = vsel %vm500_vm0, %v1175_v57, 0.0 }
  0xec   :  { %v912_v63 = vpop.f32.mrf.mxu1  ;;  %502 = vadd.xlane.f32.xlu0 %v501_v62 }
  0xed   :  { %v873_v0 = vpop.f32.mrf.mxu0  ;;  %v473_v1 = vadd.f32 %v911_v60, %v871_v58 }
  0xee   :  { %v874_v2 = vadd.f32 %v873_v0, %v872_v61  ;;  %v913_v3 = vpop.f32.mrf.mxu1 }
  0xef   :  { %v914_v4 = vadd.f32 %v913_v3, %v912_v63  ;;  %v875_v5 = vpop.f32.mrf.mxu0  ;;  %v504_v6 = vsel %vm500_vm0, %v473_v1, 0.0 }
  0xf0   :  { %v915_v7 = vpop.f32.mrf.mxu1  ;;  %505 = vadd.xlane.f32.xlu0 %v504_v6 }
  0xf1   :  { %v876_v8 = vpop.f32.mrf.mxu0  ;;  %v478_v9 = vadd.f32 %v914_v4, %v874_v2 }
  0xf2   :  { %v877_v10 = vadd.f32 %v876_v8, %v875_v5  ;;  %v916_v11 = vpop.f32.mrf.mxu1 }
  0xf3   :  { %v917_v12 = vadd.f32 %v916_v11, %v915_v7  ;;  %v878_v13 = vpop.f32.mrf.mxu0  ;;  %v507_v14 = vsel %vm500_vm0, %v478_v9, 0.0 }
  0xf4   :  { %v918_v15 = vpop.f32.mrf.mxu1  ;;  %508 = vadd.xlane.f32.xlu1 %v507_v14 }
  0xf5   :  { %v879_v16 = vpop.f32.mrf.mxu0  ;;  %v481_v17 = vadd.f32 %v917_v12, %v877_v10  ;;  %v1005_v10 = vmov 0  }
  0xf6   :  { %v880_v18 = vadd.f32 %v879_v16, %v878_v13  ;;  %v919_v19 = vpop.f32.mrf.mxu1  ;;  %931 = vset.pattern.permute.xlu1 %v1005_v10  ;;  %932 = vset.pattern.permute.xlu0 %v1005_v10 }
  0xf7   :  { %v920_v20 = vadd.f32 %v919_v19, %v918_v15  ;;  %v881_v21 = vpop.f32.mrf.mxu0  ;;  %v510_v22 = vsel %vm500_vm0, %v481_v17, 0.0 }
  0xf8   :  { %v921_v23 = vpop.f32.mrf.mxu1  ;;  %511 = vadd.xlane.f32.xlu1 %v510_v22 }
  0xf9   :  { %v882_v24 = vpop.f32.mrf.mxu0  ;;  %v486_v25 = vadd.f32 %v920_v20, %v880_v18 }
  0xfa   :  { %v883_v26 = vadd.f32 %v882_v24, %v881_v21  ;;  %v922_v27 = vpop.f32.mrf.mxu1 }
  0xfb   :  { %v923_v28 = vadd.f32 %v922_v27, %v921_v23  ;;  %v884_v29 = vpop.f32.mrf.mxu0  ;;  %v513_v30 = vsel %vm500_vm0, %v486_v25, 0.0  ;;  %v663_v27 = vld [vmem:[%s1317_s3 + $0x10] sm:$0xff] }
  0xfc   :  { %v924_v31 = vpop.f32.mrf.mxu1  ;;  %514 = vadd.xlane.f32.xlu0 %v513_v30  ;;  %v666_v30 = vld [vmem:[%s1317_s3 + $0x28] sm:$0xff] }
  0xfd   :  { %v885_v32 = vpop.f32.mrf.mxu0  ;;  %v489_v33 = vadd.f32 %v923_v28, %v883_v26  ;;  %v662_v26 = vld [vmem:[%s1317_s3 + $0x8] sm:$0xff]  ;;  %v664_v28 = vld [vmem:[%s1317_s3 + $0x18] sm:$0xff] }
  0xfe   :  { %v886_v34 = vadd.f32 %v885_v32, %v884_v29  ;;  %v925_v35 = vpop.f32.mrf.mxu1  ;;  %v665_v29 = vld [vmem:[%s1317_s3 + $0x20] sm:$0xff] }
  0xff   :  { %v926_v36 = vadd.f32 %v925_v35, %v924_v31  ;;  %v887_v37 = vpop.f32.mrf.mxu0  ;;  %v516_v38 = vsel %vm500_vm0, %v489_v33, 0.0 }
 0x100   :  { %v927_v39 = vpop.f32.mrf.mxu1  ;;  %517 = vadd.xlane.f32.xlu1 %v516_v38 }
 0x101   :  { %v888_v40 = vpop.f32.mrf.mxu0  ;;  %v494_v41 = vadd.f32 %v926_v36, %v886_v34 }
 0x102   :  { %v889_v42 = vadd.f32 %v888_v40, %v887_v37  ;;  %v928_v43 = vpop.f32.mrf.mxu1 }
 0x103   :  { %v929_v44 = vadd.f32 %v928_v43, %v927_v39  ;;  %v519_v45 = vsel %vm500_vm0, %v494_v41, 0.0 }
 0x104   :  { %520 = vadd.xlane.f32.xlu0 %v519_v45 }
 0x105   :  { %v497_v46 = vadd.f32 %v929_v44, %v889_v42  ;;  %v581_v44 = vld [vmem:[%s1318_s2] sm:$0xff] }
 0x107   :  { %v522_v47 = vsel %vm500_vm0, %v497_v46, 0.0 }
 0x108   :  { %523 = vadd.xlane.f32.xlu1 %v522_v47 }
 0x175   :  { %v503_v48 = vpop.xlane.xlu0 %502 }
 0x176   :  { %v525_v49 = vmul.f32 0.03125, %v503_v48 }
 0x178   :  { %v1187_v50 = vsub.f32 %v1175_v57, %v525_v49 }
 0x179   :  { %v506_v51 = vpop.xlane.xlu0 %505 }
 0x17a   :  { %v526_v52 = vmul.f32 0.03125, %v506_v51  ;;  %v541_v53 = vmul.f32 %v1187_v50, %v1187_v50  ;;  %v582_v51 = vld [vmem:[%s1318_s2 + $0x8] sm:$0xff] }
 0x17c   :  { %v1191_v54 = vsub.f32 %v473_v1, %v526_v52  ;;  %v549_v55 = vsel %vm500_vm0, %v541_v53, 0.0 }
 0x17d   :  { %v509_v56 = vpop.xlane.xlu1 %508  ;;  %550 = vadd.xlane.f32.xlu0 %v549_v55  ;;  %v668_v55 = vld [vmem:[%s1317_s3 + $0x38] sm:$0xff] }
 0x17e   :  { %v527_v58 = vmul.f32 0.03125, %v509_v56  ;;  %v542_v59 = vmul.f32 %v1191_v54, %v1191_v54 }
 0x180   :  { %v1196_v60 = vsub.f32 %v478_v9, %v527_v58  ;;  %v552_v57 = vsel %vm500_vm0, %v542_v59, 0.0 }
 0x181   :  { %v512_v61 = vpop.xlane.xlu1 %511  ;;  %553 = vadd.xlane.f32.xlu1 %v552_v57  ;;  %v583_v57 = vld [vmem:[%s1318_s2 + $0x10] sm:$0xff] }
 0x182   :  { %v528_v62 = vmul.f32 0.03125, %v512_v61  ;;  %v543_v63 = vmul.f32 %v1196_v60, %v1196_v60 }
 0x184   :  { %v1201_v0 = vsub.f32 %v481_v17, %v528_v62  ;;  %v555_v1 = vsel %vm500_vm0, %v543_v63, 0.0 }
 0x185   :  { %556 = vadd.xlane.f32.xlu0 %v555_v1  ;;  %v515_v2 = vpop.xlane.xlu0 %514 }
 0x186   :  { %v529_v3 = vmul.f32 0.03125, %v515_v2  ;;  %v544_v4 = vmul.f32 %v1201_v0, %v1201_v0 }
 0x188   :  { %v1206_v5 = vsub.f32 %v486_v25, %v529_v3  ;;  %v558_v6 = vsel %vm500_vm0, %v544_v4, 0.0  ;;  %v661_v25 = vld [vmem:[%s1317_s3] sm:$0xff]  ;;  %v584_v3 = vld [vmem:[%s1318_s2 + $0x18] sm:$0xff] }
 0x189   :  { %v518_v7 = vpop.xlane.xlu1 %517  ;;  %559 = vadd.xlane.f32.xlu1 %v558_v6 }
 0x18a   :  { %v530_v8 = vmul.f32 0.03125, %v518_v7  ;;  %v545_v9 = vmul.f32 %v1206_v5, %v1206_v5 }
 0x18c   :  { %v1211_v11 = vsub.f32 %v489_v33, %v530_v8  ;;  %v561_v12 = vsel %vm500_vm0, %v545_v9, 0.0  ;;  %v585_v9 = vld [vmem:[%s1318_s2 + $0x20] sm:$0xff] }
 0x18d   :  { %562 = vadd.xlane.f32.xlu0 %v561_v12  ;;  %v521_v13 = vpop.xlane.xlu0 %520 }
 0x18e   :  { %v531_v14 = vmul.f32 0.03125, %v521_v13  ;;  %v546_v15 = vmul.f32 %v1211_v11, %v1211_v11  ;;  %v586_v13 = vld [vmem:[%s1318_s2 + $0x28] sm:$0xff] }
 0x190   :  { %v1216_v16 = vsub.f32 %v494_v41, %v531_v14  ;;  %v564_v17 = vsel %vm500_vm0, %v546_v15, 0.0 }
 0x191   :  { %v524_v18 = vpop.xlane.xlu1 %523  ;;  %565 = vadd.xlane.f32.xlu1 %v564_v17  ;;  %v587_v17 = vld [vmem:[%s1318_s2 + $0x30] sm:$0xff] }
 0x192   :  { %v532_v19 = vmul.f32 0.03125, %v524_v18  ;;  %v547_v20 = vmul.f32 %v1216_v16, %v1216_v16 }
 0x194   :  { %v1221_v21 = vsub.f32 %v497_v46, %v532_v19  ;;  %v567_v22 = vsel %vm500_vm0, %v547_v20, 0.0  ;;  %v588_v20 = vld [vmem:[%s1318_s2 + $0x38] sm:$0xff] }
 0x195   :  { %568 = vadd.xlane.f32.xlu0 %v567_v22 }
 0x196   :  { %v548_v23 = vmul.f32 %v1221_v21, %v1221_v21 }
 0x198   :  { %v570_v24 = vsel %vm500_vm0, %v548_v23, 0.0 }
 0x199   :  { %571 = vadd.xlane.f32.xlu1 %v570_v24  ;;  %v667_v24 = vld [vmem:[%s1317_s3 + $0x30] sm:$0xff] }
 0x1aa   :  { %671 = vperm.xlu1 %931, %v661_v25  }
 0x1ab   :  { %676 = vperm.xlu0 %932, %v662_v26  }
 0x1ae   :  { %681 = vperm.xlu1 %931, %v663_v27  }
 0x1af   :  { %686 = vperm.xlu0 %932, %v664_v28  }
 0x1b2   :  { %691 = vperm.xlu1 %931, %v665_v29  }
 0x1b3   :  { %696 = vperm.xlu0 %932, %v666_v30  }
 0x206   :  { %v551_v31 = vpop.xlane.xlu0 %550 }
 0x207   :  { %v573_v32 = vmul.f32 0.03125, %v551_v31 }
 0x209   :  { %v589_v33 = vadd.f32 1e-05, %v573_v32 }
 0x20a   :  { %v554_v34 = vpop.xlane.xlu1 %553 }
 0x20b   :  { %989 = vrsqrt.f32 %v589_v33  ;;  %v574_v35 = vmul.f32 0.03125, %v554_v34 }
 0x20d   :  { %v590_v36 = vadd.f32 1e-05, %v574_v35 }
 0x20e   :  { %v557_v37 = vpop.xlane.xlu0 %556 }
 0x20f   :  { %991 = vrsqrt.f32 %v590_v36  ;;  %v575_v38 = vmul.f32 0.03125, %v557_v37 }
 0x211   :  { %v591_v39 = vadd.f32 1e-05, %v575_v38 }
 0x212   :  { %v560_v40 = vpop.xlane.xlu1 %559 }
 0x213   :  { %993 = vrsqrt.f32 %v591_v39  ;;  %v576_v41 = vmul.f32 0.03125, %v560_v40 }
 0x215   :  { %v592_v42 = vadd.f32 1e-05, %v576_v41 }
 0x216   :  { %v563_v43 = vpop.xlane.xlu0 %562 }
 0x217   :  { %995 = vrsqrt.f32 %v592_v42  ;;  %v577_v45 = vmul.f32 0.03125, %v563_v43 }
 0x218   :  { %v990_v46 = vpop.eup %989 }
 0x219   :  { %v593_v47 = vadd.f32 1e-05, %v577_v45  ;;  %v605_v48 = vmul.f32 %v990_v46, %v581_v44 }
 0x21a   :  { %v566_v49 = vpop.xlane.xlu1 %565 }
 0x21b   :  { %997 = vrsqrt.f32 %v593_v47  ;;  %v578_v52 = vmul.f32 0.03125, %v566_v49  ;;  %615 = vperm.xlu0 %932, %v605_v48  }
 0x21c   :  { %v992_v53 = vpop.eup %991 }
 0x21d   :  { %v594_v56 = vadd.f32 1e-05, %v578_v52  ;;  %v606_v58 = vmul.f32 %v992_v53, %v582_v51 }
 0x21e   :  { %v569_v59 = vpop.xlane.xlu0 %568 }
 0x21f   :  { %999 = vrsqrt.f32 %v594_v56  ;;  %v579_v61 = vmul.f32 0.03125, %v569_v59  ;;  %620 = vperm.xlu1 %931, %v606_v58   ;;  %706 = vperm.xlu0 %932, %v668_v55  }
 0x220   :  { %v994_v62 = vpop.eup %993 }
 0x221   :  { %v595_v63 = vadd.f32 1e-05, %v579_v61  ;;  %v607_v1 = vmul.f32 %v994_v62, %v583_v57 }
 0x222   :  { %v572_v2 = vpop.xlane.xlu1 %571 }
 0x223   :  { %1001 = vrsqrt.f32 %v595_v63  ;;  %v580_v4 = vmul.f32 0.03125, %v572_v2  ;;  %625 = vperm.xlu1 %931, %v607_v1  }
 0x224   :  { %v996_v6 = vpop.eup %995 }
 0x225   :  { %v596_v7 = vadd.f32 1e-05, %v580_v4  ;;  %v608_v8 = vmul.f32 %v996_v6, %v584_v3 }
 0x226   :  { %v677_v25 = vpop.permute.xlu0 %676  ;;  %v672_v26 = vpop.permute.xlu1 %671 }
 0x227   :  { %1003 = vrsqrt.f32 %v596_v7  ;;  %630 = vperm.xlu1 %931, %v608_v8  }
 0x228   :  { %v998_v10 = vpop.eup %997 }
 0x229   :  { %v609_v12 = vmul.f32 %v998_v10, %v585_v9 }
 0x22a   :  { %v687_v27 = vpop.permute.xlu0 %686  ;;  %v682_v28 = vpop.permute.xlu1 %681 }
 0x22b   :  { %635 = vperm.xlu1 %931, %v609_v12  }
 0x22c   :  { %v1000_v14 = vpop.eup %999 }
 0x22d   :  { %v610_v15 = vmul.f32 %v1000_v14, %v586_v13 }
 0x22e   :  { %v697_v29 = vpop.permute.xlu0 %696  ;;  %v692_v30 = vpop.permute.xlu1 %691 }
 0x22f   :  { %640 = vperm.xlu1 %931, %v610_v15  }
 0x230   :  { %v1002_v18 = vpop.eup %1001 }
 0x231   :  { %v611_v19 = vmul.f32 %v1002_v18, %v587_v17 }
 0x233   :  { %645 = vperm.xlu1 %931, %v611_v19  }
 0x234   :  { %v1004_v22 = vpop.eup %1003 }
 0x235   :  { %v612_v23 = vmul.f32 %v1004_v22, %v588_v20 }
 0x237   :  { %650 = vperm.xlu1 %931, %v612_v23  }
 0x23b   :  { %701 = vperm.xlu1 %931, %v667_v24  }
 0x296   :  { %v616_v31 = vpop.permute.xlu0 %615 }
 0x297   :  { %v653_v32 = vmul.f32 %v616_v31, %v1187_v50 }
 0x299   :  { %v709_v33 = vadd.f32 %v672_v26, %v653_v32 }
 0x29a   :  { %v621_v34 = vpop.permute.xlu1 %620  ;;  %v707_v4 = vpop.permute.xlu0 %706 }
 0x29b   :  { %vm717_vm1 = vcmp.gt.f32.partialorder %v709_v33, 0.0  ;;  %v725_v35 = vmul.f32 0.2, %v709_v33  ;;  %v654_v36 = vmul.f32 %v621_v34, %v1191_v54 }
 0x29d   :  { %v733_v37 = vsel %vm717_vm1, %v709_v33, %v725_v35  ;;  %v710_v38 = vadd.f32 %v677_v25, %v654_v36 }
 0x29e   :  { %v842_v39 = vpack.c.bf16 %v733_v37, %v733_v37  ;;  %v626_v40 = vpop.permute.xlu1 %625 }
 0x29f   :  { %vm718_vm3 = vcmp.gt.f32.partialorder %v710_v38, 0.0  ;;  %v726_v41 = vmul.f32 0.2, %v710_v38  ;;  %v655_v42 = vmul.f32 %v626_v40, %v1196_v60 }
 0x2a0   :  { %774 = vst.msk [vmem:[%s1319_s4] sm:$0xf] %vm773_vm2, %v842_v39 }
 0x2a1   :  { %v734_v50 = vsel %vm718_vm3, %v710_v38, %v726_v41  ;;  %v711_v43 = vadd.f32 %v682_v28, %v655_v42 }
 0x2a2   :  { %v843_v44 = vpack.c.bf16 %v734_v50, %v734_v50  ;;  %v631_v45 = vpop.permute.xlu1 %630 }
 0x2a3   :  { %vm719_vm4 = vcmp.gt.f32.partialorder %v711_v43, 0.0  ;;  %v727_v54 = vmul.f32 0.2, %v711_v43  ;;  %v656_v46 = vmul.f32 %v631_v45, %v1201_v0 }
 0x2a4   :  { %775 = vst.msk [vmem:[%s1319_s4 + $0x4] sm:$0xf] %vm773_vm2, %v843_v44 }
 0x2a5   :  { %v735_v47 = vsel %vm719_vm4, %v711_v43, %v727_v54  ;;  %v712_v60 = vadd.f32 %v687_v27, %v656_v46 }
 0x2a6   :  { %v844_v48 = vpack.c.bf16 %v735_v47, %v735_v47  ;;  %v636_v49 = vpop.permute.xlu1 %635 }
 0x2a7   :  { %vm720_vm5 = vcmp.gt.f32.partialorder %v712_v60, 0.0  ;;  %v728_v51 = vmul.f32 0.2, %v712_v60  ;;  %v657_v52 = vmul.f32 %v636_v49, %v1206_v5 }
 0x2a8   :  { %776 = vst.msk [vmem:[%s1319_s4 + $0x8] sm:$0xf] %vm773_vm2, %v844_v48 }
 0x2a9   :  { %v736_v53 = vsel %vm720_vm5, %v712_v60, %v728_v51  ;;  %v713_v0 = vadd.f32 %v692_v30, %v657_v52 }
 0x2aa   :  { %v845_v55 = vpack.c.bf16 %v736_v53, %v736_v53  ;;  %v641_v56 = vpop.permute.xlu1 %640 }
 0x2ab   :  { %vm721_vm6 = vcmp.gt.f32.partialorder %v713_v0, 0.0  ;;  %v729_v58 = vmul.f32 0.2, %v713_v0  ;;  %v658_v59 = vmul.f32 %v641_v56, %v1211_v11 }
 0x2ac   :  { %777 = vst.msk [vmem:[%s1319_s4 + $0xc] sm:$0xf] %vm773_vm2, %v845_v55 }
 0x2ad   :  { %v737_v57 = vsel %vm721_vm6, %v713_v0, %v729_v58  ;;  %v714_v5 = vadd.f32 %v697_v29, %v658_v59 }
 0x2ae   :  { %v846_v61 = vpack.c.bf16 %v737_v57, %v737_v57  ;;  %v646_v62 = vpop.permute.xlu1 %645 }
 0x2af   :  { %vm722_vm7 = vcmp.gt.f32.partialorder %v714_v5, 0.0  ;;  %v730_v63 = vmul.f32 0.2, %v714_v5  ;;  %v659_v6 = vmul.f32 %v646_v62, %v1216_v16 }
 0x2b0   :  { %778 = vst.msk [vmem:[%s1319_s4 + $0x10] sm:$0xf] %vm773_vm2, %v846_v61 }
 0x2b1   :  { %v738_v1 = vsel %vm722_vm7, %v714_v5, %v730_v63 }
 0x2b2   :  { %v847_v2 = vpack.c.bf16 %v738_v1, %v738_v1  ;;  %v651_v3 = vpop.permute.xlu1 %650 }
 0x2b3   :  { %v660_v11 = vmul.f32 %v651_v3, %v1221_v21 }
 0x2b4   :  { %779 = vst.msk [vmem:[%s1319_s4 + $0x14] sm:$0xf] %vm773_vm2, %v847_v2 }
 0x2b5   :  { %v716_v7 = vadd.f32 %v707_v4, %v660_v11 }
 0x2b6   :  { %v702_v8 = vpop.permute.xlu1 %701 }
 0x2b7   :  { %vm724_vm8 = vcmp.gt.f32.partialorder %v716_v7, 0.0  ;;  %v732_v9 = vmul.f32 0.2, %v716_v7  ;;  %v715_v10 = vadd.f32 %v702_v8, %v659_v6 }
 0x2b9   :  { %v740_v12 = vsel %vm724_vm8, %v716_v7, %v732_v9  ;;  %vm723_vm9 = vcmp.gt.f32.partialorder %v715_v10, 0.0  ;;  %v731_v13 = vmul.f32 0.2, %v715_v10 }
 0x2ba   :  { %v849_v14 = vpack.c.bf16 %v740_v12, %v740_v12 }
 0x2bb   :  { %v739_v15 = vsel %vm723_vm9, %v715_v10, %v731_v13 }
 0x2bc   :  { %781 = vst.msk [vmem:[%s1319_s4 + $0x1c] sm:$0xf] %vm773_vm2, %v849_v14  ;;  %v848_v21 = vpack.c.bf16 %v739_v15, %v739_v15 }
 0x2be   :  { %780 = vst.msk [vmem:[%s1319_s4 + $0x18] sm:$0xf] %vm773_vm2, %v848_v21 }

// kernel: prior_vae_forward.9
= control target key start
LH: loop header
LB: loop body
LE: loop exit
PB: predicated region body
PF: predicated region fallthrough
CT: control target
= control target key end

     0   :  { %v984_v1 = vmov 0   ;;  %vm751_vm0 = vcmask 15360   ;;  %s1233_s1 = inlined_call_operand.vmem [shape: bf16[1024,2], index: 1, kind: input, shape index: {}]   ;;  %s1234_s0 = inlined_call_operand.vmem [shape: bf16[16,1024], index: 0, kind: input, shape index: {}]   ;;  %s1235_s2 = inlined_call_operand.vmem [shape: f32[16,1], index: 2, kind: input, shape index: {}]   ;;  %s1236_s3 = inlined_call_operand.vmem [shape: f32[16,2], index: 3, kind: output, shape index: {}]  }
   0x1   :  { %v920_v0 = vld [vmem:[%s1233_s1 + $0x78] sm:$0xff]   ;;  %919 = vset.pattern.permute.xlu0 %v984_v1  ;;  %v924_v5 = vld [vmem:[%s1233_s1 + $0x70] sm:$0xff]   ;;  %v928_v9 = vld [vmem:[%s1233_s1 + $0x68] sm:$0xff]  }
   0x2   :  { %v921_v2 = vld [vmem:[%s1233_s1 + $0xf8] sm:$0xff]   ;;  %830 = vmatprep.subr.bf16.mxu0 %v920_v0  ;;  %v925_v6 = vld [vmem:[%s1233_s1 + $0xf0] sm:$0xff]   ;;  %v929_v10 = vld [vmem:[%s1233_s1 + $0xe8] sm:$0xff]  }
   0x3   :  { %v922_v3 = vld [vmem:[%s1233_s1 + $0x38] sm:$0xff]   ;;  %852 = vmatprep.subr.bf16.mxu1 %v921_v2  ;;  %v926_v7 = vld [vmem:[%s1233_s1 + $0x30] sm:$0xff]   ;;  %v930_v11 = vld [vmem:[%s1233_s1 + $0x28] sm:$0xff]  }
   0x4   :  { %v923_v4 = vld [vmem:[%s1233_s1 + $0xb8] sm:$0xff]   ;;  %831 = vmatpush3.bf16.msra.mxu0 %v922_v3  ;;  %v927_v8 = vld [vmem:[%s1233_s1 + $0xb0] sm:$0xff]   ;;  %v931_v12 = vld [vmem:[%s1233_s1 + $0xa8] sm:$0xff]  }
   0x5   :  { %853 = vmatpush3.bf16.msra.mxu1 %v923_v4  ;;  %832 = vmatprep.subr.bf16.mxu0 %v924_v5  ;;  %v932_v13 = vld [vmem:[%s1233_s1 + $0x60] sm:$0xff]   ;;  %v936_v17 = vld [vmem:[%s1233_s1 + $0x58] sm:$0xff]   ;;  %v940_v21 = vld [vmem:[%s1233_s1 + $0x50] sm:$0xff]  }
   0x6   :  { %854 = vmatprep.subr.bf16.mxu1 %v925_v6  ;;  %v933_v14 = vld [vmem:[%s1233_s1 + $0xe0] sm:$0xff]   ;;  %v937_v18 = vld [vmem:[%s1233_s1 + $0xd8] sm:$0xff]   ;;  %v941_v22 = vld [vmem:[%s1233_s1 + $0xd0] sm:$0xff]  }
   0x7   :  { %v934_v15 = vld [vmem:[%s1233_s1 + $0x20] sm:$0xff]   ;;  %v938_v19 = vld [vmem:[%s1233_s1 + $0x18] sm:$0xff]   ;;  %v942_v23 = vld [vmem:[%s1233_s1 + $0x10] sm:$0xff]  }
   0x8   :  { %833 = vmatpush3.bf16.msra.mxu0 %v926_v7  ;;  %v935_v16 = vld [vmem:[%s1233_s1 + $0xa0] sm:$0xff]   ;;  %v939_v20 = vld [vmem:[%s1233_s1 + $0x98] sm:$0xff]   ;;  %v943_v24 = vld [vmem:[%s1233_s1 + $0x90] sm:$0xff]  }
   0x9   :  { %855 = vmatpush3.bf16.msra.mxu1 %v927_v8  ;;  %834 = vmatprep.subr.bf16.mxu0 %v928_v9  ;;  %v944_v25 = vld [vmem:[%s1233_s1 + $0x48] sm:$0xff]   ;;  %v948_v29 = vld [vmem:[%s1233_s1 + $0x40] sm:$0xff]   ;;  %v952_v41 = vld [vmem:[%s1233_s1 + $0x178] sm:$0xff]  }
   0xa   :  { %856 = vmatprep.subr.bf16.mxu1 %v929_v10  ;;  %v945_v26 = vld [vmem:[%s1233_s1 + $0xc8] sm:$0xff]   ;;  %v949_v30 = vld [vmem:[%s1233_s1 + $0xc0] sm:$0xff]   ;;  %v953_v42 = vld [vmem:[%s1233_s1 + $0x1f8] sm:$0xff]  }
   0xb   :  { %v946_v27 = vld [vmem:[%s1233_s1 + $0x8] sm:$0xff]   ;;  %v950_v31 = vld [vmem:[%s1233_s1] sm:$0xff]   ;;  %v954_v43 = vld [vmem:[%s1233_s1 + $0x138] sm:$0xff]  }
   0xc   :  { %835 = vmatpush3.bf16.msra.mxu0 %v930_v11  ;;  %v947_v28 = vld [vmem:[%s1233_s1 + $0x88] sm:$0xff]   ;;  %v951_v32 = vld [vmem:[%s1233_s1 + $0x80] sm:$0xff]   ;;  %v955_v44 = vld [vmem:[%s1233_s1 + $0x1b8] sm:$0xff]  }
   0xd   :  { %857 = vmatpush3.bf16.msra.mxu1 %v931_v12  ;;  %836 = vmatprep.subr.bf16.mxu0 %v932_v13  ;;  %v15_v33 = vld [vmem:[%s1234_s0] sm:$0xff]  ;;  %v16_v35 = vld [vmem:[%s1234_s0 + $0x8] sm:$0xff]  ;;  %v956_v45 = vld [vmem:[%s1233_s1 + $0x170] sm:$0xff]  }
   0xe   :  { %858 = vmatprep.subr.bf16.mxu1 %v933_v14  ;;  %v19_v34 = vld [vmem:[%s1234_s0 + $0x20] sm:$0xff]  ;;  %v20_v38 = vld [vmem:[%s1234_s0 + $0x28] sm:$0xff]  ;;  %v957_v46 = vld [vmem:[%s1233_s1 + $0x1f0] sm:$0xff]  }
   0xf   :  { %v758_v36 = vcombine.low %v15_v33, %v19_v34  ;;  %v759_v37 = vcombine.high %v15_v33, %v19_v34  ;;  %v760_v39 = vcombine.low %v16_v35, %v20_v38  ;;  %v761_v40 = vcombine.high %v16_v35, %v20_v38  ;;  %v958_v47 = vld [vmem:[%s1233_s1 + $0x130] sm:$0xff]   ;;  %v960_v49 = vld [vmem:[%s1233_s1 + $0x168] sm:$0xff]   ;;  %v964_v53 = vld [vmem:[%s1233_s1 + $0x160] sm:$0xff]  }
  0x10   :  { %837 = vmatpush3.bf16.msra.mxu0 %v934_v15  ;;  %v959_v48 = vld [vmem:[%s1233_s1 + $0x1b0] sm:$0xff]   ;;  %v961_v50 = vld [vmem:[%s1233_s1 + $0x1e8] sm:$0xff]   ;;  %v965_v54 = vld [vmem:[%s1233_s1 + $0x1e0] sm:$0xff]  }
  0x11   :  { %859 = vmatpush3.bf16.msra.mxu1 %v935_v16  ;;  %838 = vmatprep.subr.bf16.mxu0 %v936_v17  ;;  %v962_v51 = vld [vmem:[%s1233_s1 + $0x128] sm:$0xff]   ;;  %v966_v55 = vld [vmem:[%s1233_s1 + $0x120] sm:$0xff]   ;;  %v968_v57 = vld [vmem:[%s1233_s1 + $0x158] sm:$0xff]  }
  0x12   :  { %860 = vmatprep.subr.bf16.mxu1 %v937_v18  ;;  %619 = vmatprep.mubr.bf16.mxu0 %v759_v37  ;;  %v963_v52 = vld [vmem:[%s1233_s1 + $0x1a8] sm:$0xff]   ;;  %v967_v56 = vld [vmem:[%s1233_s1 + $0x1a0] sm:$0xff]   ;;  %v969_v58 = vld [vmem:[%s1233_s1 + $0x1d8] sm:$0xff]  }
  0x13   :  { %660 = vmatprep.mubr.bf16.mxu1 %v761_v40  ;;  %v970_v59 = vld [vmem:[%s1233_s1 + $0x118] sm:$0xff]   ;;  %v972_v61 = vld [vmem:[%s1233_s1 + $0x150] sm:$0xff]   ;;  %v976_v1 = vld [vmem:[%s1233_s1 + $0x148] sm:$0xff]  }
  0x14   :  { %839 = vmatpush3.bf16.msra.mxu0 %v938_v19  ;;  %v971_v60 = vld [vmem:[%s1233_s1 + $0x198] sm:$0xff]   ;;  %v973_v62 = vld [vmem:[%s1233_s1 + $0x1d0] sm:$0xff]   ;;  %v977_v2 = vld [vmem:[%s1233_s1 + $0x1c8] sm:$0xff]  }
  0x15   :  { %861 = vmatpush3.bf16.msra.mxu1 %v939_v20  ;;  %840 = vmatprep.subr.bf16.mxu0 %v940_v21  ;;  %v974_v63 = vld [vmem:[%s1233_s1 + $0x110] sm:$0xff]   ;;  %v978_v3 = vld [vmem:[%s1233_s1 + $0x108] sm:$0xff]   ;;  %v980_v5 = vld [vmem:[%s1233_s1 + $0x140] sm:$0xff]  }
  0x16   :  { %862 = vmatprep.subr.bf16.mxu1 %v941_v22  ;;  %v975_v0 = vld [vmem:[%s1233_s1 + $0x190] sm:$0xff]   ;;  %v979_v4 = vld [vmem:[%s1233_s1 + $0x188] sm:$0xff]   ;;  %v981_v6 = vld [vmem:[%s1233_s1 + $0x1c0] sm:$0xff]  }
  0x17   :  { %v982_v7 = vld [vmem:[%s1233_s1 + $0x100] sm:$0xff]   ;;  %v17_v9 = vld [vmem:[%s1234_s0 + $0x10] sm:$0xff]  ;;  %v18_v13 = vld [vmem:[%s1234_s0 + $0x18] sm:$0xff] }
  0x18   :  { %841 = vmatpush3.bf16.msra.mxu0 %v942_v23  ;;  %v983_v8 = vld [vmem:[%s1233_s1 + $0x180] sm:$0xff]   ;;  %v21_v10 = vld [vmem:[%s1234_s0 + $0x30] sm:$0xff]  ;;  %v22_v14 = vld [vmem:[%s1234_s0 + $0x38] sm:$0xff] }
  0x19   :  { %863 = vmatpush3.bf16.msra.mxu1 %v943_v24  ;;  %842 = vmatprep.subr.bf16.mxu0 %v944_v25  ;;  %v762_v11 = vcombine.low %v17_v9, %v21_v10  ;;  %v763_v12 = vcombine.high %v17_v9, %v21_v10  ;;  %v151_v15 = vld [vmem:[%s1235_s2] sm:$0xff]  ;;  %v764_v16 = vcombine.low %v18_v13, %v22_v14  ;;  %v152_v18 = vld [vmem:[%s1235_s2 + $0x8] sm:$0xff] }
  0x1a   :  { %864 = vmatprep.subr.bf16.mxu1 %v945_v26  ;;  %v765_v17 = vcombine.high %v18_v13, %v22_v14  ;;  %155 = vperm.xlu0 %919, %v151_v15  }
  0x1c   :  { %843 = vmatpush3.bf16.msra.mxu0 %v946_v27 }
  0x1d   :  { %865 = vmatpush3.bf16.msra.mxu1 %v947_v28  ;;  %844 = vmatprep.subr.bf16.mxu0 %v948_v29 }
  0x1e   :  { %866 = vmatprep.subr.bf16.mxu1 %v949_v30  ;;  %160 = vperm.xlu0 %919, %v152_v18  }
  0x20   :  { %845 = vmatpush3.bf16.msra.mxu0 %v950_v31 }
  0x21   :  { %867 = vmatpush3.bf16.msra.mxu1 %v951_v32  ;;  %874 = vmatprep.subr.bf16.mxu0 %v952_v41 }
  0x22   :  { %896 = vmatprep.subr.bf16.mxu1 %v953_v42 }
  0x23   :  { %620 = vmatmul.mubr.bf16.vlgmr.msra.gmra.mxu0 %v758_v36 }
  0x24   :  { %661 = vmatmul.mubr.bf16.vlgmr.msra.gmra.mxu1 %v760_v39  ;;  %875 = vmatpush3.bf16.msra.mxu0 %v954_v43 }
  0x25   :  { %897 = vmatpush3.bf16.msra.mxu1 %v955_v44  ;;  %876 = vmatprep.subr.bf16.mxu0 %v956_v45 }
  0x26   :  { %898 = vmatprep.subr.bf16.mxu1 %v957_v46  ;;  %701 = vmatprep.mubr.bf16.mxu0 %v763_v12 }
  0x27   :  { %742 = vmatprep.mubr.bf16.mxu1 %v765_v17 }
  0x28   :  { %877 = vmatpush3.bf16.msra.mxu0 %v958_v47 }
  0x29   :  { %899 = vmatpush3.bf16.msra.mxu1 %v959_v48  ;;  %878 = vmatprep.subr.bf16.mxu0 %v960_v49 }
  0x2a   :  { %900 = vmatprep.subr.bf16.mxu1 %v961_v50 }
  0x2c   :  { %879 = vmatpush3.bf16.msra.mxu0 %v962_v51 }
  0x2d   :  { %901 = vmatpush3.bf16.msra.mxu1 %v963_v52  ;;  %880 = vmatprep.subr.bf16.mxu0 %v964_v53 }
  0x2e   :  { %902 = vmatprep.subr.bf16.mxu1 %v965_v54 }
  0x30   :  { %881 = vmatpush3.bf16.msra.mxu0 %v966_v55 }
  0x31   :  { %903 = vmatpush3.bf16.msra.mxu1 %v967_v56  ;;  %882 = vmatprep.subr.bf16.mxu0 %v968_v57 }
  0x32   :  { %904 = vmatprep.subr.bf16.mxu1 %v969_v58 }
  0x34   :  { %883 = vmatpush3.bf16.msra.mxu0 %v970_v59 }
  0x35   :  { %905 = vmatpush3.bf16.msra.mxu1 %v971_v60  ;;  %884 = vmatprep.subr.bf16.mxu0 %v972_v61 }
  0x36   :  { %906 = vmatprep.subr.bf16.mxu1 %v973_v62 }
  0x38   :  { %885 = vmatpush3.bf16.msra.mxu0 %v974_v63 }
  0x39   :  { %907 = vmatpush3.bf16.msra.mxu1 %v975_v0  ;;  %886 = vmatprep.subr.bf16.mxu0 %v976_v1 }
  0x3a   :  { %908 = vmatprep.subr.bf16.mxu1 %v977_v2 }
  0x3c   :  { %887 = vmatpush3.bf16.msra.mxu0 %v978_v3 }
  0x3d   :  { %909 = vmatpush3.bf16.msra.mxu1 %v979_v4  ;;  %888 = vmatprep.subr.bf16.mxu0 %v980_v5 }
  0x3e   :  { %910 = vmatprep.subr.bf16.mxu1 %v981_v6 }
  0x40   :  { %889 = vmatpush3.bf16.msra.mxu0 %v982_v7 }
  0x41   :  { %911 = vmatpush3.bf16.msra.mxu1 %v983_v8 }
  0x43   :  { %702 = vmatmul.mubr.bf16.vlgmr.msra.gmra.mxu0 %v762_v11 }
  0x44   :  { %743 = vmatmul.mubr.bf16.vlgmr.msra.gmra.mxu1 %v764_v16 }
  0x95   :  { %v156_v24 = vpop.permute.xlu0 %155 }
  0x99   :  { %v161_v32 = vpop.permute.xlu0 %160 }
  0xe3   :  { %v846_v19 = vpop.f32.mrf.mxu0 }
  0xe4   :  { %v868_v20 = vpop.f32.mrf.mxu1 }
  0xe5   :  { %v847_v21 = vpop.f32.mrf.mxu0 }
  0xe6   :  { %v869_v22 = vpop.f32.mrf.mxu1  ;;  %v848_v25 = vadd.f32 %v847_v21, %v846_v19 }
  0xe7   :  { %v849_v23 = vpop.f32.mrf.mxu0  ;;  %v870_v28 = vadd.f32 %v869_v22, %v868_v20 }
  0xe8   :  { %v871_v26 = vpop.f32.mrf.mxu1  ;;  %v622_v29 = vadd.f32 %v848_v25, %v156_v24 }
  0xe9   :  { %v850_v27 = vpop.f32.mrf.mxu0 }
  0xea   :  { %v851_v30 = vadd.f32 %v850_v27, %v849_v23  ;;  %v872_v31 = vpop.f32.mrf.mxu1  ;;  %v663_v36 = vadd.f32 %v870_v28, %v622_v29 }
  0xeb   :  { %v873_v41 = vadd.f32 %v872_v31, %v871_v26 }
  0xec   :  { %v625_v37 = vadd.f32 %v851_v30, %v161_v32 }
  0xee   :  { %v666_v46 = vadd.f32 %v873_v41, %v625_v37 }
 0x103   :  { %v890_v33 = vpop.f32.mrf.mxu0 }
 0x104   :  { %v912_v34 = vpop.f32.mrf.mxu1 }
 0x105   :  { %v891_v35 = vpop.f32.mrf.mxu0 }
 0x106   :  { %v892_v38 = vadd.f32 %v891_v35, %v890_v33  ;;  %v913_v39 = vpop.f32.mrf.mxu1 }
 0x107   :  { %v893_v40 = vpop.f32.mrf.mxu0  ;;  %v914_v43 = vadd.f32 %v913_v39, %v912_v34 }
 0x108   :  { %v704_v42 = vadd.f32 %v892_v38, %v663_v36  ;;  %v915_v44 = vpop.f32.mrf.mxu1 }
 0x109   :  { %v894_v45 = vpop.f32.mrf.mxu0 }
 0x10a   :  { %v745_v47 = vadd.f32 %v914_v43, %v704_v42  ;;  %v895_v48 = vadd.f32 %v894_v45, %v893_v40  ;;  %v916_v49 = vpop.f32.mrf.mxu1 }
 0x10b   :  { %v917_v51 = vadd.f32 %v916_v49, %v915_v44 }
 0x10c   :  { %752 = vst.msk [vmem:[%s1236_s3] sm:$0xff] %vm751_vm0, %v745_v47  ;;  %v707_v50 = vadd.f32 %v895_v48, %v666_v46 }
 0x10e   :  { %v748_v52 = vadd.f32 %v917_v51, %v707_v50 }
 0x110   :  { %753 = vst.msk [vmem:[%s1236_s3 + $0x8] sm:$0xff] %vm751_vm0, %v748_v52 }

</bundles_post_ra>
